<compile_context>
chip_gen: v5e
topology: v5e:2x2
jax: 0.10.0
libtpu: 0.0.40
codegen_flags: <defaults>
</compile_context>

<pallas_src>
import functools

import numpy as np
import jax
import jax.numpy as jnp
from jax.experimental import pallas as pl
from jax.experimental.pallas import tpu as pltpu


# ------------------------------ Pallas kernel -------------------------------

def base_block2d_kernel(xstk_ref, wcat_ref, mpool_ref, gain_ref, shift_ref,
                        out_ref):
    """Fused conv3x3('same') -> channel LN -> FiLM scale/shift -> SiLU.

    xstk_ref : (B*H, KH*(W+2)*Cin)  stacked 3-row padded input windows
    wcat_ref : (KH*(W+2)*Cin, 2*W*Cout)  [conv taps | conv taps @ mpool]
    mpool_ref: (W*Cout, W*Cout)  block-diagonal channel-group mean matrix
    gain_ref : (B*H, W*Cout)  LN gain * (scale + 1), per-row slab
    shift_ref: (B*H, W*Cout)  FiLM shift, per-row slab
    out_ref  : (B*H, W*Cout)  lane-dense output slab
    """
    WC = out_ref.shape[1]
    dot = functools.partial(jnp.dot,
                            preferred_element_type=jnp.float32,
                            precision=jax.lax.Precision.HIGHEST)

    # One MXU push: conv result and its per-(h, w) channel mean side by side.
    r = dot(xstk_ref[...], wcat_ref[...])              # (BH, 2*WC)
    centered = r[:, :WC] - r[:, WC:]                   # conv - E_c[conv]

    # Biased channel variance via the block-diagonal group-mean matmul.
    var = dot(centered * centered, mpool_ref[...])     # (BH, WC)

    # LN (weight-only, eps=1e-5) fused with FiLM: gain = g * (scale + 1).
    y = centered * jax.lax.rsqrt(var + 1e-5) * gain_ref[...] + shift_ref[...]

    # SiLU
    out_ref[...] = (y * jax.nn.sigmoid(y)).astype(out_ref.dtype)


# --------------------- shape-only constants (host, cached) -------------------

@functools.lru_cache(maxsize=None)
def _packing_indicators(Cin, Cout, W, KW, pad):
    """0/1 indicator tensors mapping (dx, wo, ci, co) -> slab rows/cols."""
    Wp = W + 2 * pad
    A = np.zeros((KW, W, Cin, Wp * Cin), np.float32)
    for dx in range(KW):
        for wo in range(W):
            for ci in range(Cin):
                A[dx, wo, ci, (wo + dx) * Cin + ci] = 1.0
    Bm = np.zeros((W, Cout, W * Cout), np.float32)
    for wo in range(W):
        for co in range(Cout):
            Bm[wo, co, wo * Cout + co] = 1.0
    return A, Bm


@functools.lru_cache(maxsize=None)
def _group_mean(W, Cout):
    """(W*Cout, W*Cout) block-diagonal matrix averaging each Cout-lane group."""
    return np.kron(np.eye(W, dtype=np.float32),
                   np.full((Cout, Cout), 1.0 / Cout, np.float32))


# ------------------------------- fused forward -------------------------------

@jax.jit
def base_block2d(x, w, g, scale, shift):
    """BaseBlock2D forward: conv3x3 -> channel LN -> scale/shift -> SiLU."""
    B, Cin, H, W = x.shape
    Cout, _, KH, KW = w.shape
    pad = (KH - 1) // 2
    Hp, Wp = H + 2 * pad, W + 2 * pad
    Wci = Wp * Cin
    WC = W * Cout
    BH = B * H
    hi = jax.lax.Precision.HIGHEST

    # --- pack conv weights into the fused tap matrix (on device, in this jit) ---
    A, Bm = _packing_indicators(Cin, Cout, W, KW, pad)
    # wflat[dy, (wo+dx)*Cin + ci, wo*Cout + co] = w[co, ci, dy, dx]
    wflat = jnp.einsum('oidk,kwip,woq->dpq',
                       w.astype(jnp.float32), jnp.asarray(A), jnp.asarray(Bm),
                       precision=hi).reshape(KH * Wci, WC)
    mpool = jnp.asarray(_group_mean(W, Cout))                       # (WC, WC)
    # Fold the channel-mean pooling into the conv weights: [conv | mean] taps.
    wcat = jnp.concatenate([wflat, jnp.dot(wflat, mpool, precision=hi)], axis=1)

    # --- input: NCHW -> padded NHWC row slabs -> stacked KH-row windows ---
    x_nhwc = jnp.transpose(x, (0, 2, 3, 1)).astype(jnp.float32)
    x_pad = jnp.pad(x_nhwc, ((0, 0), (pad, pad), (pad, pad), (0, 0)))
    x_rows = x_pad.reshape(B, Hp, Wci)
    xstk = jnp.concatenate([x_rows[:, dy:dy + H, :] for dy in range(KH)],
                           axis=-1).reshape(BH, KH * Wci)

    # --- LN gain fused with FiLM scale; per-row (B*H, W*Cout) slabs ---
    gain_slab = jnp.repeat(jnp.tile(g[None, :].astype(jnp.float32)
                                    * (scale.astype(jnp.float32) + 1.0),
                                    (1, W)), H, axis=0)             # (BH, WC)
    shift_slab = jnp.repeat(jnp.tile(shift.astype(jnp.float32), (1, W)),
                            H, axis=0)                              # (BH, WC)

    out_slab = pl.pallas_call(
        base_block2d_kernel,
        out_shape=jax.ShapeDtypeStruct((BH, WC), jnp.float32),
        grid=(1,),
        in_specs=[
            pl.BlockSpec((BH, KH * Wci), lambda i: (0, 0)),   # stacked input rows
            pl.BlockSpec((KH * Wci, 2 * WC), lambda i: (0, 0)),  # [conv|mean] taps
            pl.BlockSpec((WC, WC), lambda i: (0, 0)),         # group-mean matrix
            pl.BlockSpec((BH, WC), lambda i: (0, 0)),         # LN*FiLM gain slab
            pl.BlockSpec((BH, WC), lambda i: (0, 0)),         # FiLM shift slab
        ],
        out_specs=pl.BlockSpec((BH, WC), lambda i: (0, 0)),
        compiler_params=pltpu.CompilerParams(
            dimension_semantics=("arbitrary",)),
    )(xstk, wcat, mpool, gain_slab, shift_slab)

    out_nhwc = out_slab.reshape(B, H, W, Cout)
    return jnp.transpose(out_nhwc, (0, 3, 1, 2))                    # back to NCHW


# ------------------------------ pure-JAX reference ---------------------------

def reference_forward(x_nchw, w_oihw, g, scale, shift):
    prec = jax.lax.Precision.HIGHEST
    conv = jax.lax.conv_general_dilated(
        x_nchw, w_oihw, window_strides=(1, 1), padding="SAME",
        dimension_numbers=("NCHW", "OIHW", "NCHW"), precision=prec)
    mean = jnp.mean(conv, axis=1, keepdims=True)
    var = jnp.mean((conv - mean) ** 2, axis=1, keepdims=True)       # unbiased=False
    normed = (conv - mean) * jax.lax.rsqrt(var + 1e-5) * g[None, :, None, None]
    normed = normed * (scale[:, :, None, None] + 1.0) + shift[:, :, None, None]
    return normed * jax.nn.sigmoid(normed)                          # SiLU


# ------------------------------------ main ------------------------------------

if __name__ == "__main__":
    B, Cin, H, W = 2, 4, 16, 16
    Cout = 8

    key = jax.random.PRNGKey(0)
    k = jax.random.split(key, 5)
    x = jax.random.normal(k[0], (B, Cin, H, W), jnp.float32)
    w_conv = jax.random.normal(k[1], (Cout, Cin, 3, 3), jnp.float32) * 0.1
    g = 1.0 + 0.05 * jax.random.normal(k[2], (Cout,), jnp.float32)   # LN gain
    scale = jax.random.normal(k[3], (B, Cout), jnp.float32) * 0.1    # FiLM scale
    shift = jax.random.normal(k[4], (B, Cout), jnp.float32) * 0.1    # FiLM shift

    out = jax.block_until_ready(base_block2d(x, w_conv, g, scale, shift))
    ref = jax.block_until_ready(reference_forward(x, w_conv, g, scale, shift))

    assert out.shape == (B, Cout, H, W)
    max_err = float(jnp.max(jnp.abs(out - ref)))
    assert jnp.allclose(out, ref, atol=1e-3, rtol=1e-3), f"max abs err {max_err}"

    print("KERNEL_OK")
</pallas_src>

<mosaic_0001>
module attributes {stable_mosaic.version = 11 : i64} {
  func.func @base_block2d_kernel(%arg0: i32, %arg1: memref<32x216xf32, #tpu.memory_space<vmem>>, %arg2: memref<216x256xf32, #tpu.memory_space<vmem>>, %arg3: memref<128x128xf32, #tpu.memory_space<vmem>>, %arg4: memref<32x128xf32, #tpu.memory_space<vmem>>, %arg5: memref<32x128xf32, #tpu.memory_space<vmem>>, %arg6: memref<32x128xf32, #tpu.memory_space<vmem>>) attributes {dimension_semantics = [#tpu.dimension_semantics<arbitrary>], iteration_bounds = array<i64: 1>, scalar_prefetch = 0 : i64, scratch_operands = 0 : i64, tpu.core_type = #tpu.core_type<tc>, window_params = [{pipeline_mode = #tpu.pipeline_mode<synchronous>, transform_indices = @transform_0, window_bounds = array<i64: 32, 216>}, {pipeline_mode = #tpu.pipeline_mode<synchronous>, transform_indices = @transform_1, window_bounds = array<i64: 216, 256>}, {pipeline_mode = #tpu.pipeline_mode<synchronous>, transform_indices = @transform_2, window_bounds = array<i64: 128, 128>}, {pipeline_mode = #tpu.pipeline_mode<synchronous>, transform_indices = @transform_3, window_bounds = array<i64: 32, 128>}, {pipeline_mode = #tpu.pipeline_mode<synchronous>, transform_indices = @transform_4, window_bounds = array<i64: 32, 128>}, {pipeline_mode = #tpu.pipeline_mode<synchronous>, transform_indices = @transform_5, window_bounds = array<i64: 32, 128>}]} {
    %c0 = arith.constant 0 : index
    %c0_0 = arith.constant 0 : index
    %0 = vector.load %arg1[%c0, %c0_0] : memref<32x216xf32, #tpu.memory_space<vmem>>, vector<32x216xf32>
    %c0_1 = arith.constant 0 : index
    %c0_2 = arith.constant 0 : index
    %1 = vector.load %arg2[%c0_1, %c0_2] : memref<216x256xf32, #tpu.memory_space<vmem>>, vector<216x256xf32>
    %cst = arith.constant dense<0.000000e+00> : vector<32x256xf32>
    %2 = tpu.matmul %0, %1, %cst {dimension_numbers = #tpu.dot_dimension_numbers<[1], [0], [0], [1], [0, 0, 1, 1], [], []>, precision = #tpu.contract_precision<fp32>} : vector<32x216xf32>, vector<216x256xf32>, vector<32x256xf32> -> vector<32x256xf32>
    %3 = vector.extract_strided_slice %2 {offsets = [0, 0], sizes = [32, 128], strides = [1, 1]} : vector<32x256xf32> to vector<32x128xf32>
    %4 = vector.extract_strided_slice %2 {offsets = [0, 128], sizes = [32, 128], strides = [1, 1]} : vector<32x256xf32> to vector<32x128xf32>
    %5 = arith.subf %3, %4 : vector<32x128xf32>
    %6 = arith.mulf %5, %5 : vector<32x128xf32>
    %c0_3 = arith.constant 0 : index
    %c0_4 = arith.constant 0 : index
    %7 = vector.load %arg3[%c0_3, %c0_4] : memref<128x128xf32, #tpu.memory_space<vmem>>, vector<128x128xf32>
    %cst_5 = arith.constant dense<0.000000e+00> : vector<32x128xf32>
    %8 = tpu.matmul %6, %7, %cst_5 {dimension_numbers = #tpu.dot_dimension_numbers<[1], [0], [0], [1], [0, 0, 1, 1], [], []>, precision = #tpu.contract_precision<fp32>} : vector<32x128xf32>, vector<128x128xf32>, vector<32x128xf32> -> vector<32x128xf32>
    %cst_6 = arith.constant 9.99999974E-6 : f32
    %9 = vector.broadcast %cst_6 : f32 to vector<32x128xf32>
    %10 = arith.addf %8, %9 : vector<32x128xf32>
    %11 = math.rsqrt %10 : vector<32x128xf32>
    %12 = arith.mulf %5, %11 : vector<32x128xf32>
    %c0_7 = arith.constant 0 : index
    %c0_8 = arith.constant 0 : index
    %13 = vector.load %arg4[%c0_7, %c0_8] : memref<32x128xf32, #tpu.memory_space<vmem>>, vector<32x128xf32>
    %14 = arith.mulf %12, %13 : vector<32x128xf32>
    %c0_9 = arith.constant 0 : index
    %c0_10 = arith.constant 0 : index
    %15 = vector.load %arg5[%c0_9, %c0_10] : memref<32x128xf32, #tpu.memory_space<vmem>>, vector<32x128xf32>
    %16 = arith.addf %14, %15 : vector<32x128xf32>
    %17 = arith.negf %16 : vector<32x128xf32>
    %18 = math.exp %17 : vector<32x128xf32>
    %cst_11 = arith.constant 1.000000e+00 : f32
    %19 = vector.broadcast %cst_11 : f32 to vector<32x128xf32>
    %20 = arith.addf %19, %18 : vector<32x128xf32>
    %21 = arith.divf %19, %20 : vector<32x128xf32>
    %22 = arith.mulf %16, %21 : vector<32x128xf32>
    %c0_12 = arith.constant 0 : index
    %c0_13 = arith.constant 0 : index
    %23 = vector.load %arg6[%c0_12, %c0_13] : memref<32x128xf32, #tpu.memory_space<vmem>>, vector<32x128xf32>
    tpu.vector_store %arg6[%c0_12, %c0_13], %22 {strides = array<i32>} : memref<32x128xf32, #tpu.memory_space<vmem>>, vector<32x128xf32>,
    return
  }
  func.func @transform_0(%arg0: i32) -> (i32, i32) {
    %c0_i32 = arith.constant 0 : i32
    %c0_i32_0 = arith.constant 0 : i32
    %c0_i32_1 = arith.constant 0 : i32
    return %c0_i32, %c0_i32_0 : i32, i32
  }
  func.func @transform_1(%arg0: i32) -> (i32, i32) {
    %c0_i32 = arith.constant 0 : i32
    %c0_i32_0 = arith.constant 0 : i32
    %c0_i32_1 = arith.constant 0 : i32
    return %c0_i32, %c0_i32_0 : i32, i32
  }
  func.func @transform_2(%arg0: i32) -> (i32, i32) {
    %c0_i32 = arith.constant 0 : i32
    %c0_i32_0 = arith.constant 0 : i32
    %c0_i32_1 = arith.constant 0 : i32
    return %c0_i32, %c0_i32_0 : i32, i32
  }
  func.func @transform_3(%arg0: i32) -> (i32, i32) {
    %c0_i32 = arith.constant 0 : i32
    %c0_i32_0 = arith.constant 0 : i32
    %c0_i32_1 = arith.constant 0 : i32
    return %c0_i32, %c0_i32_0 : i32, i32
  }
  func.func @transform_4(%arg0: i32) -> (i32, i32) {
    %c0_i32 = arith.constant 0 : i32
    %c0_i32_0 = arith.constant 0 : i32
    %c0_i32_1 = arith.constant 0 : i32
    return %c0_i32, %c0_i32_0 : i32, i32
  }
  func.func @transform_5(%arg0: i32) -> (i32, i32) {
    %c0_i32 = arith.constant 0 : i32
    %c0_i32_0 = arith.constant 0 : i32
    %c0_i32_1 = arith.constant 0 : i32
    return %c0_i32, %c0_i32_0 : i32, i32
  }
}

</mosaic_0001>

<bundles_post_ra>
// kernel: tile.14
= control target key start
LH: loop header
LB: loop body
LE: loop exit
PB: predicated region body
PF: predicated region fallthrough
CT: control target
= control target key end

     0   :  { %s7_s6 = smov 3  ;;  %s21_s9 = smov 3  ;;  %vm4_vm0 = vcmask 64512   ;;  %vm11_vm1 = vcmask 1048512   ;;  %vm18_vm2 = vcmask 982912   ;;  %vm25_vm3 = vcmask 917312   ;;  %s223_s0 = inlined_call_operand.vmem [shape: f32[2,16,8], index: 0, kind: input, shape index: {}]   ;;  %s224_s1 = inlined_call_operand.vmem [shape: f32[2,128], index: 1, kind: output, shape index: {}]  }
   0x1   :  { %v117_v0 = vld [vmem:[%s223_s0 + $0xf] ss:$16 sm:%s7_s6]   ;;  %s147_s10 = smov 120   ;;  %v119_v1 = vld [vmem:[%s223_s0 + $0xd] ss:$16 sm:%s21_s9]   ;;  %s148_s13 = smov 104  }
   0x2   :  { %9 = vrot.lane.b32.xlu0 %v117_v0, %s147_s10  ;;  %23 = vrot.lane.b32.xlu1 %v119_v1, %s148_s13  ;;  %s14_s14 = smov 3  ;;  %s28_s15 = smov 3  ;;  %vm32_vm4 = vcmask 851712   ;;  %vm39_vm5 = vcmask 786112   ;;  %vm46_vm6 = vcmask 720512   ;;  %vm53_vm7 = vcmask 654912  }
   0x3   :  { %v118_v2 = vld [vmem:[%s223_s0 + $0xe] ss:$16 sm:%s14_s14]   ;;  %v120_v3 = vld [vmem:[%s223_s0 + $0xc] ss:$16 sm:%s28_s15]   ;;  %s35_s20 = smov 3  ;;  %s149_s23 = smov 112  }
   0x4   :  { %v121_v4 = vld [vmem:[%s223_s0 + $0xb] ss:$16 sm:%s35_s20]   ;;  %s150_s24 = smov 88   ;;  %s151_s25 = smov 96   ;;  %vm60_vm8 = vcmask 589312   ;;  %vm67_vm9 = vcmask 523712  }
   0x5   :  { %37 = vrot.lane.b32.xlu2 %v121_v4, %s150_s24  ;;  %s49_s26 = smov 3  ;;  %s42_s27 = smov 3  ;;  %vm74_vm10 = vcmask 458112   ;;  %vm81_vm11 = vcmask 392512   ;;  %vm88_vm12 = vcmask 326912   ;;  %vm95_vm13 = vcmask 261312  }
   0x6   :  { %s56_s28 = smov 3  ;;  %v123_v5 = vld [vmem:[%s223_s0 + $0x9] ss:$16 sm:%s49_s26]   ;;  %v122_v6 = vld [vmem:[%s223_s0 + $0xa] ss:$16 sm:%s42_s27]   ;;  %s152_s6 = smov 72  }
   0x7   :  { %v124_v7 = vld [vmem:[%s223_s0 + $0x8] ss:$16 sm:%s56_s28]   ;;  %s153_s7 = smov 80   ;;  %s154_s8 = smov 64   ;;  %vm102_vm14 = vcmask 195712   ;;  %vm109_vm15 = vcmask 130112  }
   0x8   :  { %s70_s9 = smov 3  ;;  %s63_s10 = smov 3 }
   0x9   :  { %s77_s11 = smov 3  ;;  %v126_v8 = vld [vmem:[%s223_s0 + $0x6] ss:$16 sm:%s70_s9]   ;;  %v125_v9 = vld [vmem:[%s223_s0 + $0x7] ss:$16 sm:%s63_s10]   ;;  %s155_s18 = smov 48  }
   0xa   :  { %16 = vrot.lane.b32.xlu0 %v118_v2, %s149_s23  ;;  %30 = vrot.lane.b32.xlu1 %v120_v3, %s151_s25  ;;  %v127_v10 = vld [vmem:[%s223_s0 + $0x5] ss:$16 sm:%s77_s11]   ;;  %s156_s19 = smov 56   ;;  %s157_s20 = smov 40  }
   0xb   :  { %s91_s21 = smov 3  ;;  %s84_s22 = smov 3 }
   0xc   :  { %s98_s23 = smov 3  ;;  %v129_v11 = vld [vmem:[%s223_s0 + $0x3] ss:$16 sm:%s91_s21]   ;;  %v128_v12 = vld [vmem:[%s223_s0 + $0x4] ss:$16 sm:%s84_s22]   ;;  %s158_s30 = smov 24  }
   0xd   :  { %44 = vrot.lane.b32.xlu2 %v122_v6, %s153_s7  ;;  %v130_v13 = vld [vmem:[%s223_s0 + $0x2] ss:$16 sm:%s98_s23]   ;;  %s159_s2 = smov 32   ;;  %s160_s3 = smov 16  }
   0xe   :  { %s105_s4 = smov 3  ;;  %s161_s7 = smov 8  }
   0xf   :  { %v131_v14 = vld [vmem:[%s223_s0 + $0x1] ss:$16 sm:%s105_s4]  }
  0x12   :  { %51 = vrot.lane.b32.xlu0 %v123_v5, %s152_s6  ;;  %58 = vrot.lane.b32.xlu1 %v124_v7, %s154_s8  ;;  %s2_s8 = smov 3 }
  0x13   :  { %v3_v15 = vld [vmem:[%s223_s0] ss:$16 sm:%s2_s8]  }
  0x14   :  { %5 = vst.msk [vmem:[#allocation0] sm:$0x3] %vm4_vm0, %v3_v15  }
  0x15   :  { %65 = vrot.lane.b32.xlu2 %v125_v9, %s156_s19 }
  0x1a   :  { %72 = vrot.lane.b32.xlu0 %v126_v8, %s155_s18  ;;  %79 = vrot.lane.b32.xlu1 %v127_v10, %s157_s20 }
  0x1d   :  { %86 = vrot.lane.b32.xlu2 %v128_v12, %s159_s2 }
  0x22   :  { %93 = vrot.lane.b32.xlu0 %v129_v11, %s158_s30  ;;  %100 = vrot.lane.b32.xlu1 %v130_v13, %s160_s3 }
  0x25   :  { %107 = vrot.lane.b32.xlu2 %v131_v14, %s161_s7 }
  0x5f   :  { %v38_v16 = vpop.permute.xlu2 %37  }
  0x67   :  { %v45_v17 = vpop.permute.xlu2 %44  }
  0x6f   :  { %v66_v19 = vpop.permute.xlu2 %65  }
  0x74   :  { %v10_v18 = vpop.permute.xlu0 %9   ;;  %v24_v20 = vpop.permute.xlu1 %23  }
  0x75   :  { %12 = vst.msk [vmem:[#allocation0] sm:$0x3] %vm11_vm1, %v10_v18  }
  0x77   :  { %v87_v22 = vpop.permute.xlu2 %86  }
  0x7c   :  { %v17_v21 = vpop.permute.xlu0 %16   ;;  %v31_v23 = vpop.permute.xlu1 %30  }
  0x7d   :  { %19 = vst.msk [vmem:[#allocation0] sm:$0x3] %vm18_vm2, %v17_v21  }
  0x7e   :  { %26 = vst.msk [vmem:[#allocation0] sm:$0x3] %vm25_vm3, %v24_v20  }
  0x7f   :  { %33 = vst.msk [vmem:[#allocation0] sm:$0x3] %vm32_vm4, %v31_v23   ;;  %v108_v25 = vpop.permute.xlu2 %107  }
  0x80   :  { %40 = vst.msk [vmem:[#allocation0] sm:$0x3] %vm39_vm5, %v38_v16  }
  0x81   :  { %47 = vst.msk [vmem:[#allocation0] sm:$0x3] %vm46_vm6, %v45_v17  }
  0x84   :  { %v52_v24 = vpop.permute.xlu0 %51   ;;  %v59_v26 = vpop.permute.xlu1 %58  }
  0x85   :  { %54 = vst.msk [vmem:[#allocation0] sm:$0x3] %vm53_vm7, %v52_v24  }
  0x86   :  { %61 = vst.msk [vmem:[#allocation0] sm:$0x3] %vm60_vm8, %v59_v26  }
  0x87   :  { %68 = vst.msk [vmem:[#allocation0] sm:$0x3] %vm67_vm9, %v66_v19  }
  0x8c   :  { %v73_v27 = vpop.permute.xlu0 %72   ;;  %v80_v28 = vpop.permute.xlu1 %79  }
  0x8d   :  { %75 = vst.msk [vmem:[#allocation0] sm:$0x3] %vm74_vm10, %v73_v27  }
  0x8e   :  { %82 = vst.msk [vmem:[#allocation0] sm:$0x3] %vm81_vm11, %v80_v28  }
  0x8f   :  { %89 = vst.msk [vmem:[#allocation0] sm:$0x3] %vm88_vm12, %v87_v22  }
  0x94   :  { %v94_v29 = vpop.permute.xlu0 %93   ;;  %v101_v30 = vpop.permute.xlu1 %100  }
  0x95   :  { %96 = vst.msk [vmem:[#allocation0] sm:$0x3] %vm95_vm13, %v94_v29  }
  0x96   :  { %103 = vst.msk [vmem:[#allocation0] sm:$0x3] %vm102_vm14, %v101_v30  }
  0x97   :  { %110 = vst.msk [vmem:[#allocation0] sm:$0x3] %vm109_vm15, %v108_v25  }
  0x9e   :  { %v113_v31 = vld [vmem:[#allocation0] sm:$0x3] }
  0x9f   :  { %116 = vst [vmem:[%s224_s1] sm:$0x3] %v113_v31 }

// kernel: base_block2d.1
= control target key start
LH: loop header
LB: loop body
LE: loop exit
PB: predicated region body
PF: predicated region fallthrough
CT: control target
= control target key end

     0   :  { %vm82_vm0 = vcmask 719872   ;;  %s4045_s1 = inlined_call_operand.vmem [shape: f32[216,256], index: 1, kind: input, shape index: {}]   ;;  %s4046_s0 = inlined_call_operand.vmem [shape: f32[32,216], index: 0, kind: input, shape index: {}]   ;;  %s4047_s2 = inlined_call_operand.vmem [shape: f32[128,128], index: 2, kind: input, shape index: {}]   ;;  %s4048_s3 = inlined_call_operand.vmem [shape: f32[32,128], index: 3, kind: input, shape index: {}]   ;;  %s4049_s4 = inlined_call_operand.vmem [shape: f32[32,128], index: 4, kind: input, shape index: {}]   ;;  %s4050_s5 = inlined_call_operand.vmem [shape: f32[32,128], index: 5, kind: output, shape index: {}]  }
   0x1   :  { %v58_v0 = vld [vmem:[%s4045_s1 + $0xf0] sm:$0xff]  ;;  %v56_v1 = vld [vmem:[%s4045_s1 + $0xe0] sm:$0xff] }
   0x2   :  { %v54_v2 = vld [vmem:[%s4045_s1 + $0xd0] sm:$0xff]  ;;  %v2406_v3 = vand.u32 4294901760, %v58_v0  ;;  %v2408_v4 = vand.u32 4294901760, %v56_v1  ;;  %v52_v6 = vld [vmem:[%s4045_s1 + $0xc0] sm:$0xff] }
   0x3   :  { %v2410_v5 = vand.u32 4294901760, %v54_v2  ;;  %v50_v7 = vld [vmem:[%s4045_s1 + $0xb0] sm:$0xff]  ;;  %v48_v8 = vld [vmem:[%s4045_s1 + $0xa0] sm:$0xff]  ;;  %v2421_v9 = vand.u32 4294901760, %v52_v6 }
   0x4   :  { %v2423_v10 = vand.u32 4294901760, %v50_v7  ;;  %v2425_v11 = vand.u32 4294901760, %v48_v8  ;;  %v46_v12 = vld [vmem:[%s4045_s1 + $0x90] sm:$0xff]  ;;  %v44_v13 = vld [vmem:[%s4045_s1 + $0x80] sm:$0xff]  ;;  %96 = vmatpush.msra.mxu0 %v2406_v3  ;;  %v2435_v14 = vsub.f32 %v58_v0, %v2406_v3  ;;  %v2438_v15 = vsub.f32 %v56_v1, %v2408_v4  ;;  %343 = vmatpush.msra.mxu3 %v2406_v3 }
   0x5   :  { %v2442_v16 = vsub.f32 %v54_v2, %v2410_v5  ;;  %v2444_v17 = vand.u32 4294901760, %v46_v12  ;;  %v42_v18 = vld [vmem:[%s4045_s1 + $0x70] sm:$0xff]  ;;  %v2450_v19 = vsub.f32 %v52_v6, %v2421_v9  ;;  %v2455_v21 = vand.u32 4294901760, %v44_v13  ;;  %v40_v29 = vld [vmem:[%s4045_s1 + $0x60] sm:$0xff] }
   0x6   :  { %v2453_v20 = vsub.f32 %v50_v7, %v2423_v10  ;;  %v2458_v22 = vsub.f32 %v48_v8, %v2425_v11  ;;  %98 = vmatpush.msra.mxu0 %v2408_v4  ;;  %275 = vmatpush.msra.mxu2 %v2435_v14  ;;  %v162_v23 = vand.u32 4294901760, %v2435_v14  ;;  %v4066_v24 = vand.u32 4294901760, %v2438_v15  ;;  %v38_v36 = vld [vmem:[%s4045_s1 + $0x50] sm:$0xff]  ;;  %v36_v42 = vld [vmem:[%s4045_s1 + $0x40] sm:$0xff] }
   0x7   :  { %v4063_v25 = vand.u32 4294901760, %v2442_v16  ;;  %345 = vmatpush.msra.mxu3 %v2408_v4  ;;  %v4062_v26 = vand.u32 4294901760, %v2450_v19  ;;  %v2467_v27 = vand.u32 4294901760, %v42_v18  ;;  %v2470_v28 = vsub.f32 %v46_v12, %v2444_v17  ;;  %v34_v47 = vld [vmem:[%s4045_s1 + $0x30] sm:$0xff]  ;;  %v32_v55 = vld [vmem:[%s4045_s1 + $0x20] sm:$0xff] }
   0x8   :  { %100 = vmatpush.msra.mxu0 %v2410_v5  ;;  %278 = vmatpush.msra.mxu2 %v2438_v15  ;;  %v163_v30 = vsub.f32 %v2435_v14, %v162_v23  ;;  %v169_v31 = vsub.f32 %v2438_v15, %v4066_v24  ;;  %v4060_v33 = vand.u32 4294901760, %v2453_v20  ;;  %v4058_v34 = vand.u32 4294901760, %v2458_v22  ;;  %v20_v56 = vld [vmem:[%s4046_s0] sm:$0xff]  ;;  %v30_v62 = vld [vmem:[%s4045_s1 + $0x10] sm:$0xff] }
   0x9   :  { %v175_v32 = vsub.f32 %v2442_v16, %v4063_v25  ;;  %347 = vmatpush.msra.mxu3 %v2410_v5  ;;  %v2490_v35 = vsub.f32 %v44_v13, %v2455_v21  ;;  %v181_v39 = vsub.f32 %v2450_v19, %v4062_v26  ;;  %v2500_v40 = vand.u32 4294901760, %v40_v29  ;;  %v80_v6 = vld [vmem:[%s4045_s1 + $0x1a0] sm:$0xff]  ;;  %v70_v25 = vld [vmem:[%s4045_s1 + $0x150] sm:$0xff] }
   0xa   :  { %102 = vmatpush.msra.mxu0 %v2421_v9  ;;  %v164_v37 = vand.u32 4294901760, %v163_v30  ;;  %281 = vmatpush.msra.mxu2 %v2442_v16  ;;  %v170_v38 = vand.u32 4294901760, %v169_v31  ;;  %v4057_v41 = vand.u32 4294901760, %v2470_v28  ;;  %v187_v44 = vsub.f32 %v2453_v20, %v4060_v33  ;;  %v28_v12 = vld [vmem:[%s4045_s1] sm:$0xff] }
   0xb   :  { %349 = vmatpush.msra.mxu3 %v2421_v9  ;;  %v176_v43 = vand.u32 4294901760, %v175_v32  ;;  %v2511_v45 = vand.u32 4294901760, %v38_v36  ;;  %v2514_v46 = vsub.f32 %v42_v18, %v2467_v27  ;;  %v193_v48 = vsub.f32 %v2458_v22, %v4058_v34 }
   0xc   :  { %104 = vmatpush.msra.mxu0 %v2423_v10  ;;  %165 = vmatpush.msra.mxu1 %v164_v37  ;;  %v4056_v49 = vand.u32 4294901760, %v2490_v35  ;;  %v182_v50 = vand.u32 4294901760, %v181_v39  ;;  %v2526_v51 = vand.u32 4294901760, %v36_v42  ;;  %v2529_v52 = vsub.f32 %v40_v29, %v2500_v40 }
   0xd   :  { %284 = vmatpush.msra.mxu2 %v2450_v19  ;;  %351 = vmatpush.msra.mxu3 %v2423_v10  ;;  %v199_v53 = vsub.f32 %v2470_v28, %v4057_v41  ;;  %v2536_v54 = vand.u32 4294901760, %v34_v47  ;;  %v188_v57 = vand.u32 4294901760, %v187_v44  ;;  %v4055_v58 = vand.u32 4294901760, %v2514_v46 }
   0xe   :  { %106 = vmatpush.msra.mxu0 %v2425_v11  ;;  %171 = vmatpush.msra.mxu1 %v170_v38  ;;  %v2547_v59 = vsub.f32 %v38_v36, %v2511_v45  ;;  %v194_v60 = vand.u32 4294901760, %v193_v48  ;;  %v205_v61 = vsub.f32 %v2490_v35, %v4056_v49  ;;  %v2558_v63 = vand.u32 4294901760, %v32_v55  ;;  %v22_v36 = vld [vmem:[%s4046_s0 + $0x10] sm:$0xff] }
   0xf   :  { %287 = vmatpush.msra.mxu2 %v2453_v20  ;;  %353 = vmatpush.msra.mxu3 %v2425_v11  ;;  %v4053_v0 = vand.u32 4294901760, %v2529_v52  ;;  %v2562_v1 = vsub.f32 %v36_v42, %v2526_v51  ;;  %v2564_v2 = vand.u32 4294901760, %v20_v56  ;;  %v200_v7 = vand.u32 4294901760, %v199_v53 }
  0x10   :  { %108 = vmatpush.msra.mxu0 %v2444_v17  ;;  %177 = vmatpush.msra.mxu1 %v176_v43  ;;  %v2572_v8 = vsub.f32 %v34_v47, %v2536_v54  ;;  %v211_v13 = vsub.f32 %v2514_v46, %v4055_v58  ;;  %v2581_v18 = vand.u32 4294901760, %v30_v62  ;;  %v4052_v29 = vand.u32 4294901760, %v2547_v59  ;;  %v78_v43 = vld [vmem:[%s4045_s1 + $0x190] sm:$0xff] }
  0x11   :  { %290 = vmatpush.msra.mxu2 %v2458_v22  ;;  %355 = vmatpush.msra.mxu3 %v2444_v17  ;;  %v2585_v30 = vsub.f32 %v20_v56, %v2564_v2  ;;  %v206_v31 = vand.u32 4294901760, %v205_v61  ;;  %v2589_v32 = vand.u32 4294901760, %v80_v6  ;;  %v217_v37 = vsub.f32 %v2529_v52, %v4053_v0  ;;  %v74_v0 = vld [vmem:[%s4045_s1 + $0x170] sm:$0xff] }
  0x12   :  { %110 = vmatpush.msra.mxu0 %v2455_v21  ;;  %183 = vmatpush.msra.mxu1 %v182_v50  ;;  %v2598_v38 = vand.u32 4294901760, %v28_v12  ;;  %v4051_v39 = vand.u32 4294901760, %v2562_v1  ;;  %v2602_v42 = vsub.f32 %v32_v55, %v2558_v63  ;;  %v4054_v47 = vand.u32 4294901760, %v2572_v8 }
  0x13   :  { %293 = vmatpush.msra.mxu2 %v2470_v28  ;;  %357 = vmatpush.msra.mxu3 %v2455_v21  ;;  %4103 = vst [vmem:[#allocation2_spill] sm:$0xff] %v2585_v30  ;;  %v2610_v44 = vand.u32 4294901760, %v2585_v30  ;;  %v212_v48 = vand.u32 4294901760, %v211_v13  ;;  %v223_v50 = vsub.f32 %v2547_v59, %v4052_v29  ;;  %v2618_v53 = vsub.f32 %v30_v62, %v2581_v18 }
  0x14   :  { %112 = vmatpush.msra.mxu0 %v2467_v27  ;;  %189 = vmatpush.msra.mxu1 %v188_v57  ;;  %v2620_v55 = vand.u32 4294901760, %v22_v36  ;;  %v2625_v56 = vsub.f32 %v80_v6, %v2589_v32  ;;  %v2627_v57 = vand.u32 4294901760, %v78_v43  ;;  %v218_v61 = vand.u32 4294901760, %v217_v37 }
  0x15   :  { %296 = vmatpush.msra.mxu2 %v2490_v35  ;;  %359 = vmatpush.msra.mxu3 %v2467_v27  ;;  %4104 = vst [vmem:[#allocation3_spill] sm:$0xff] %v2610_v44  ;;  %v229_v62 = vsub.f32 %v2562_v1, %v4051_v39  ;;  %v2638_v13 = vsub.f32 %v28_v12, %v2598_v38  ;;  %v224_v37 = vand.u32 4294901760, %v223_v50  ;;  %v4061_v39 = vand.u32 4294901760, %v2618_v53 }
  0x16   :  { %114 = vmatpush.msra.mxu0 %v2500_v40  ;;  %195 = vmatpush.msra.mxu1 %v194_v60  ;;  %v76_v60 = vld [vmem:[%s4045_s1 + $0x180] sm:$0xff]  ;;  %v130_v6 = vsub.f32 %v2585_v30, %v2610_v44  ;;  %v2650_v12 = vsub.f32 %v22_v36, %v2620_v55  ;;  %v2675_v34 = vand.u32 4294901760, %v74_v0  ;;  %v2725_v14 = vand.u32 4294901760, %v70_v25 }
  0x17   :  { %299 = vmatpush.msra.mxu2 %v2514_v46  ;;  %361 = vmatpush.msra.mxu3 %v2500_v40  ;;  %v2652_v29 = vand.u32 4294901760, %v76_v60  ;;  %v24_v36 = vld [vmem:[%s4046_s0 + $0x20] sm:$0xff]  ;;  %v230_v50 = vand.u32 4294901760, %v229_v62  ;;  %v4065_v49 = vand.u32 4294901760, %v2638_v13  ;;  %v247_v62 = vsub.f32 %v2618_v53, %v4061_v39 }
  0x18   :  { %116 = vmatpush.msra.mxu0 %v2511_v45  ;;  %201 = vmatpush.msra.mxu1 %v200_v7  ;;  %v4059_v7 = vand.u32 4294901760, %v2602_v42  ;;  %v2672_v41 = vand.u32 4294901760, %v130_v6 }
  0x19   :  { %302 = vmatpush.msra.mxu2 %v2529_v52  ;;  %363 = vmatpush.msra.mxu3 %v2511_v45  ;;  %v2688_v6 = vsub.f32 %v76_v60, %v2652_v29  ;;  %v253_v60 = vsub.f32 %v2638_v13, %v4065_v49 }
  0x1a   :  { %118 = vmatpush.msra.mxu0 %v2526_v51  ;;  %207 = vmatpush.msra.mxu1 %v206_v31  ;;  %v235_v31 = vsub.f32 %v2572_v8, %v4054_v47  ;;  %v4064_v47 = vand.u32 4294901760, %v2625_v56  ;;  %v241_v58 = vsub.f32 %v2602_v42, %v4059_v7  ;;  %v2685_v7 = vand.u32 4294901760, %v2650_v12 }
  0x1b   :  { %305 = vmatpush.msra.mxu2 %v2547_v59  ;;  %365 = vmatpush.msra.mxu3 %v2526_v51 }
  0x1c   :  { %120 = vmatpush.msra.mxu0 %v2536_v54  ;;  %213 = vmatpush.msra.mxu1 %v212_v48  ;;  %v2661_v48 = vsub.f32 %v78_v43, %v2627_v57  ;;  %v236_v43 = vand.u32 4294901760, %v235_v31  ;;  %v2690_v31 = vand.u32 4294901760, %v24_v36  ;;  %v242_v39 = vand.u32 4294901760, %v241_v58 }
  0x1d   :  { %308 = vmatpush.msra.mxu2 %v2562_v1  ;;  %367 = vmatpush.msra.mxu3 %v2536_v54  ;;  %v248_v58 = vand.u32 4294901760, %v247_v62  ;;  %v254_v62 = vand.u32 4294901760, %v253_v60 }
  0x1e   :  { %122 = vmatpush.msra.mxu0 %v2558_v63  ;;  %219 = vmatpush.msra.mxu1 %v218_v61  ;;  %v72_v61 = vld [vmem:[%s4045_s1 + $0x160] sm:$0xff]  ;;  %v2718_v24 = vsub.f32 %v24_v36, %v2690_v31  ;;  %v26_v36 = vld [vmem:[%s4046_s0 + $0x30] sm:$0xff] }
  0x1f   :  { %311 = vmatpush.msra.mxu2 %v2572_v8  ;;  %369 = vmatpush.msra.mxu3 %v2558_v63  ;;  %v2702_v26 = vand.u32 4294901760, %v72_v61 }
  0x20   :  { %124 = vmatpush.msra.mxu0 %v2581_v18  ;;  %225 = vmatpush.msra.mxu1 %v224_v37  ;;  %v597_v37 = vsub.f32 %v2625_v56, %v4064_v47  ;;  %v2710_v47 = vsub.f32 %v74_v0, %v2675_v34  ;;  %v4105_v0 = vand.u32 4294901760, %v2661_v48 }
  0x21   :  { %314 = vmatpush.msra.mxu2 %v2602_v42  ;;  %371 = vmatpush.msra.mxu3 %v2581_v18  ;;  %v2730_v49 = vsub.f32 %v72_v61, %v2702_v26  ;;  %v4107_v61 = vand.u32 4294901760, %v2688_v6 }
  0x22   :  { %126 = vmatpush.msra.mxu0 %v2598_v38  ;;  %231 = vmatpush.msra.mxu1 %v230_v50  ;;  %v138_v50 = vsub.f32 %v2650_v12, %v2685_v7  ;;  %v598_v33 = vand.u32 4294901760, %v597_v37 }
  0x23   :  { %132 = vmatmul.f32.vlgmr.msra.gmra.mxu0 %v2672_v41  ;;  %317 = vmatpush.msra.mxu2 %v2618_v53  ;;  %v609_v60 = vsub.f32 %v2688_v6, %v4107_v61 }
  0x24   :  { %237 = vmatpush.msra.mxu1 %v236_v43  ;;  %402 = vmatpush.msrb.mxu0 %v162_v23  ;;  %v603_v43 = vsub.f32 %v2661_v48, %v4105_v0  ;;  %v4106_v23 = vand.u32 4294901760, %v2438_v15  ;;  %v2742_v15 = vand.u32 4294901760, %v138_v50  ;;  %v2748_v0 = vand.u32 4294901760, %v2718_v24 }
  0x25   :  { %320 = vmatpush.msra.mxu2 %v2638_v13  ;;  %373 = vmatpush.msra.mxu3 %v2598_v38  ;;  %v4111_v50 = vand.u32 4294901760, %v2453_v20 }
  0x26   :  { %243 = vmatpush.msra.mxu1 %v242_v39  ;;  %406 = vmatpush.msrb.mxu0 %v4106_v23  ;;  %v68_v39 = vld [vmem:[%s4045_s1 + $0x140] sm:$0xff]  ;;  %v4108_v23 = vand.u32 4294901760, %v2442_v16  ;;  %v604_v37 = vand.u32 4294901760, %v603_v43  ;;  %v4109_v16 = vand.u32 4294901760, %v2450_v19  ;;  %v610_v43 = vand.u32 4294901760, %v609_v60 }
  0x27   :  { %323 = vmatmul.f32.vlgmr.msra.gmra.mxu2 %v2585_v30  ;;  %377 = vmatmul.f32.vlgmr.msra.gmra.mxu3 %v2610_v44  ;;  %v2753_v44 = vsub.f32 %v70_v25, %v2725_v14  ;;  %v2755_v30 = vand.u32 4294901760, %v26_v36  ;;  %v2762_v61 = vand.u32 4294901760, %v68_v39  ;;  %v4110_v25 = vand.u32 4294901760, %v2710_v47 }
  0x28   :  { %535 = vmatpush.msrb.mxu2 %v2589_v32  ;;  %249 = vmatpush.msra.mxu1 %v248_v58  ;;  %v66_v58 = vld [vmem:[%s4045_s1 + $0x130] sm:$0xff] }
  0x29   :  { %410 = vmatpush.msrb.mxu0 %v4108_v23  ;;  %599 = vmatpush.msrb.mxu3 %v598_v33  ;;  %v615_v33 = vsub.f32 %v2710_v47, %v4110_v25  ;;  %v2774_v23 = vand.u32 4294901760, %v66_v58  ;;  %v4069_v19 = vand.u32 4294901760, %v2753_v44  ;;  %v64_v25 = vld [vmem:[%s4045_s1 + $0x120] sm:$0xff]  ;;  %v2791_v20 = vsub.f32 %v68_v39, %v2762_v61 }
  0x2a   :  { %255 = vmatpush.msra.mxu1 %v254_v62  ;;  %537 = vmatpush.msrb.mxu2 %v2627_v57  ;;  %v146_v62 = vsub.f32 %v2718_v24, %v2748_v0  ;;  %v2805_v39 = vand.u32 4294901760, %v64_v25 }
  0x2b   :  { %414 = vmatpush.msrb.mxu0 %v4109_v16  ;;  %257 = vmatmul.f32.vlgmr.msra.gmra.mxu1 %v2564_v2  ;;  %v2780_v16 = vsub.f32 %v26_v36, %v2755_v30  ;;  %v616_v36 = vand.u32 4294901760, %v615_v33  ;;  %v4115_v33 = vand.u32 4294901760, %v2470_v28  ;;  %v60_v28 = vld [vmem:[%s4045_s1 + $0x100] sm:$0xff] }
  0x2c   :  { %140 = vmatmul.f32.gmra.mxu0 %v2742_v15  ;;  %481 = vmatpush.msrb.mxu1 %v2406_v3  ;;  %v4112_v3 = vand.u32 4294901760, %v2730_v49 }
  0x2d   :  { %418 = vmatpush.msrb.mxu0 %v4111_v50  ;;  %605 = vmatpush.msrb.mxu3 %v604_v37  ;;  %v4113_v37 = vand.u32 4294901760, %v2458_v22  ;;  %v21_v50 = vld [vmem:[%s4046_s0 + $0x8] sm:$0xff]  ;;  %v62_v22 = vld [vmem:[%s4045_s1 + $0x110] sm:$0xff] }
  0x2e   :  { %483 = vmatpush.msrb.mxu1 %v2408_v4  ;;  %539 = vmatpush.msrb.mxu2 %v2652_v29  ;;  %v621_v60 = vsub.f32 %v2730_v49, %v4112_v3  ;;  %v2800_v4 = vand.u32 4294901760, %v146_v62  ;;  %v2803_v3 = vsub.f32 %v66_v58, %v2774_v23  ;;  %v4118_v62 = vand.u32 4294901760, %v2514_v46 }
  0x2f   :  { %422 = vmatpush.msrb.mxu0 %v4113_v37  ;;  %328 = vmatmul.f32.gmra.mxu2 %v2650_v12  ;;  %v84_v37 = vsel %vm82_vm0, %v21_v50, 0 }
  0x30   :  { %485 = vmatpush.msrb.mxu1 %v2410_v5  ;;  %611 = vmatpush.msrb.mxu3 %v610_v43  ;;  %4114 = vst [vmem:[#allocation4_spill] sm:$0xff] %v2800_v4  ;;  %v627_v5 = vsub.f32 %v2753_v44, %v4069_v19  ;;  %v2817_v43 = vand.u32 4294901760, %v2780_v16  ;;  %v622_v58 = vand.u32 4294901760, %v621_v60  ;;  %v2828_v19 = vand.u32 4294901760, %v62_v22 }
  0x31   :  { %426 = vmatpush.msrb.mxu0 %v4115_v33  ;;  %541 = vmatpush.msrb.mxu2 %v2675_v34  ;;  %v4116_v33 = vand.u32 4294901760, %v2490_v35  ;;  %v2834_v60 = vsub.f32 %v64_v25, %v2805_v39  ;;  %v4121_v46 = vand.u32 4294901760, %v2803_v3 }
  0x32   :  { %383 = vmatmul.f32.gmra.mxu3 %v2685_v7  ;;  %487 = vmatpush.msrb.mxu1 %v2421_v9  ;;  %v628_v50 = vand.u32 4294901760, %v627_v5  ;;  %v154_v35 = vsub.f32 %v2780_v16, %v2817_v43  ;;  %v4119_v9 = vand.u32 4294901760, %v2791_v20  ;;  %v23_v5 = vld [vmem:[%s4046_s0 + $0x18] sm:$0xff] }
  0x33   :  { %430 = vmatpush.msrb.mxu0 %v4116_v33  ;;  %617 = vmatpush.msrb.mxu3 %v616_v36  ;;  %v2840_v36 = vand.u32 4294901760, %v60_v28  ;;  %v2842_v33 = vand.u32 4294901760, %v84_v37 }
  0x34   :  { %148 = vmatmul.f32.gmra.mxu0 %v2800_v4  ;;  %261 = vmatmul.f32.gmra.mxu1 %v2620_v55  ;;  %v633_v25 = vsub.f32 %v2791_v20, %v4119_v9  ;;  %v4120_v4 = vand.u32 4294901760, %v2529_v52  ;;  %v4123_v52 = vand.u32 4294901760, %v2547_v59 }
  0x35   :  { %489 = vmatpush.msrb.mxu1 %v2423_v10  ;;  %543 = vmatpush.msrb.mxu2 %v2702_v26  ;;  %4117 = vst [vmem:[#allocation5_spill] sm:$0xff] %v2842_v33  ;;  %v2852_v10 = vsub.f32 %v62_v22, %v2828_v19  ;;  %v2865_v22 = vand.u32 4294901760, %v154_v35  ;;  %v2871_v9 = vsub.f32 %v60_v28, %v2840_v36 }
  0x36   :  { %434 = vmatpush.msrb.mxu0 %v4118_v62  ;;  %623 = vmatpush.msrb.mxu3 %v622_v58  ;;  %v639_v58 = vsub.f32 %v2803_v3, %v4121_v46  ;;  %v2868_v62 = vsub.f32 %v84_v37, %v2842_v33  ;;  %v87_v46 = vsel %vm82_vm0, %v23_v5, 0  ;;  %v4124_v37 = vand.u32 4294901760, %v2562_v1 }
  0x37   :  { %491 = vmatpush.msrb.mxu1 %v2425_v11  ;;  %545 = vmatpush.msrb.mxu2 %v2725_v14  ;;  %v644_v11 = vand.u32 4294901760, %v2834_v60  ;;  %v2892_v35 = vand.u32 4294901760, %v87_v46  ;;  %v4127_v1 = vand.u32 4294901760, %v2572_v8  ;;  %v4128_v5 = vand.u32 4294901760, %v2602_v42 }
  0x38   :  { %438 = vmatpush.msrb.mxu0 %v4120_v4  ;;  %333 = vmatmul.f32.gmra.mxu2 %v2718_v24  ;;  %4122 = vst [vmem:[#allocation6_spill] sm:$0xff] %v2868_v62  ;;  %v634_v4 = vand.u32 4294901760, %v633_v25  ;;  %v640_v28 = vand.u32 4294901760, %v639_v58  ;;  %v4130_v42 = vand.u32 4294901760, %v2618_v53 }
  0x39   :  { %493 = vmatpush.msrb.mxu1 %v2444_v17  ;;  %629 = vmatpush.msrb.mxu3 %v628_v50  ;;  %v650_v17 = vand.u32 4294901760, %v2852_v10  ;;  %v645_v59 = vsub.f32 %v2834_v60, %v644_v11  ;;  %v656_v50 = vand.u32 4294901760, %v2871_v9  ;;  %4126 = vst [vmem:[#allocation8_spill] sm:$0xff] %v2892_v35 }
  0x3a   :  { %442 = vmatpush.msrb.mxu0 %v4123_v52  ;;  %389 = vmatmul.f32.gmra.mxu3 %v2748_v0  ;;  %v2914_v52 = vsub.f32 %v87_v46, %v2892_v35 }
  0x3b   :  { %495 = vmatpush.msrb.mxu1 %v2455_v21  ;;  %547 = vmatpush.msrb.mxu2 %v2762_v61  ;;  %v2889_v21 = vand.u32 4294901760, %v2868_v62  ;;  %v651_v25 = vsub.f32 %v2852_v10, %v650_v17  ;;  %v646_v58 = vand.u32 4294901760, %v645_v59  ;;  %v657_v8 = vsub.f32 %v2871_v9, %v656_v50 }
  0x3c   :  { %446 = vmatpush.msrb.mxu0 %v4124_v37  ;;  %265 = vmatmul.f32.gmra.mxu1 %v2690_v31  ;;  %4129 = vst [vmem:[#allocation9_spill] sm:$0xff] %v2914_v52  ;;  %v4131_v37 = vand.u32 4294901760, %v2638_v13  ;;  %v2929_v53 = vand.u32 4294901760, %v2914_v52  ;;  %v4135_v13 = vand.u32 4294901760, %v2625_v56 }
  0x3d   :  { %156 = vmatmul.f32.gmra.mxu0 %v2865_v22  ;;  %497 = vmatpush.msrb.mxu1 %v2467_v27  ;;  %4125 = vst [vmem:[#allocation7_spill] sm:$0xff] %v2889_v21  ;;  %v25_v27 = vld [vmem:[%s4046_s0 + $0x28] sm:$0xff] }
  0x3e   :  { %635 = vmatpush.msrb.mxu3 %v634_v4  ;;  %450 = vmatpush.msrb.mxu0 %v4127_v1  ;;  %v90_v4 = vsel %vm82_vm0, %v25_v27, 0  ;;  %4133 = vst [vmem:[#allocation11_spill] sm:$0xff] %v2929_v53  ;;  %v567_v1 = vsub.f32 %v2914_v52, %v2929_v53 }
  0x3f   :  { %549 = vmatpush.msrb.mxu2 %v2774_v23  ;;  %499 = vmatpush.msrb.mxu1 %v2500_v40  ;;  %v559_v40 = vsub.f32 %v2868_v62, %v2889_v21  ;;  %v2931_v59 = vand.u32 4294901760, %v90_v4 }
  0x40   :  { %454 = vmatpush.msrb.mxu0 %v4128_v5  ;;  %641 = vmatpush.msrb.mxu3 %v640_v28  ;;  %v658_v28 = vand.u32 4294901760, %v657_v8  ;;  %v2958_v27 = vand.u32 4294901760, %v567_v1  ;;  %v4148_v8 = vand.u32 4294901760, %v2791_v20  ;;  %v47_v1 = vld [vmem:[%s4045_s1 + $0x98] sm:$0xff] }
  0x41   :  { %338 = vmatmul.f32.gmra.mxu2 %v2780_v16  ;;  %501 = vmatpush.msrb.mxu1 %v2511_v45  ;;  %v652_v45 = vand.u32 4294901760, %v651_v25  ;;  %v2926_v46 = vand.u32 4294901760, %v559_v40  ;;  %4134 = vst [vmem:[#allocation12_spill] sm:$0xff] %v2931_v59  ;;  %v57_v40 = vld [vmem:[%s4045_s1 + $0xe8] sm:$0xff] }
  0x42   :  { %551 = vmatpush.msrb.mxu2 %v2805_v39  ;;  %458 = vmatpush.msrb.mxu0 %v4130_v42  ;;  %4138 = vst [vmem:[#allocation14_spill] sm:$0xff] %v2958_v27 }
  0x43   :  { %395 = vmatmul.f32.gmra.mxu3 %v2817_v43  ;;  %503 = vmatpush.msrb.mxu1 %v2526_v51  ;;  %4132 = vst [vmem:[#allocation10_spill] sm:$0xff] %v2926_v46  ;;  %v27_v51 = vld [vmem:[%s4046_s0 + $0x38] sm:$0xff] }
  0x44   :  { %647 = vmatpush.msrb.mxu3 %v646_v58  ;;  %462 = vmatpush.msrb.mxu0 %v4131_v37  ;;  %v93_v25 = vsel %vm82_vm0, %v27_v51, 0 }
  0x45   :  { %553 = vmatpush.msrb.mxu2 %v2828_v19  ;;  %269 = vmatmul.f32.gmra.mxu1 %v2755_v30 }
  0x46   :  { %464 = vmatmul.f32.vlgmr.msrb.gmra.mxu0 %v2564_v2  ;;  %505 = vmatpush.msrb.mxu1 %v2536_v54  ;;  %v2946_v54 = vsub.f32 %v90_v4, %v2931_v59 }
  0x47   :  { %653 = vmatpush.msrb.mxu3 %v652_v45  ;;  %555 = vmatpush.msrb.mxu2 %v2840_v36 }
  0x48   :  { %507 = vmatpush.msrb.mxu1 %v2558_v63  ;;  %4136 = vst [vmem:[#allocation13_spill] sm:$0xff] %v2946_v54  ;;  %684 = vmatpush.msra.mxu0 %v2625_v56  ;;  %v4137_v63 = vand.u32 4294901760, %v2661_v48  ;;  %v2963_v56 = vand.u32 4294901760, %v93_v25 }
  0x49   :  { %796 = vmatpush.msra.mxu2 %v4135_v13  ;;  %659 = vmatpush.msrb.mxu3 %v658_v28 }
  0x4a   :  { %561 = vmatmul.f32.vlgmr.msrb.gmra.mxu2 %v2926_v46  ;;  %509 = vmatpush.msrb.mxu1 %v2581_v18  ;;  %v2961_v18 = vand.u32 4294901760, %v2946_v54  ;;  %4140 = vst [vmem:[#allocation16_spill] sm:$0xff] %v2963_v56  ;;  %v2977_v5 = vsub.f32 %v93_v25, %v2963_v56 }
  0x4b   :  { %661 = vmatmul.f32.vlgmr.msrb.gmra.mxu3 %v2842_v33  ;;  %800 = vmatpush.msra.mxu2 %v4137_v63 }
  0x4c   :  { %511 = vmatpush.msrb.mxu1 %v2598_v38  ;;  %860 = vmatpush.msra.mxu3 %v2589_v32  ;;  %4139 = vst [vmem:[#allocation15_spill] sm:$0xff] %v2961_v18  ;;  %v4141_v38 = vand.u32 4294901760, %v2688_v6  ;;  %v2992_v58 = vand.u32 4294901760, %v2977_v5 }
  0x4d   :  { %513 = vmatmul.f32.vlgmr.msrb.gmra.mxu1 %v2564_v2  ;;  %687 = vmatpush.msra.mxu0 %v2661_v48  ;;  %v575_v48 = vsub.f32 %v2946_v54, %v2961_v18  ;;  %4142 = vst [vmem:[#allocation17_spill] sm:$0xff] %v2977_v5 }
  0x4e   :  { %468 = vmatmul.f32.gmra.mxu0 %v2620_v55  ;;  %742 = vmatpush.msra.mxu1 %v2589_v32  ;;  %v4143_v32 = vand.u32 4294901760, %v2710_v47  ;;  %4146 = vst [vmem:[#allocation19_spill] sm:$0xff] %v2992_v58 }
  0x4f   :  { %862 = vmatpush.msra.mxu3 %v2627_v57  ;;  %804 = vmatpush.msra.mxu2 %v4141_v38  ;;  %v45_v38 = vld [vmem:[%s4045_s1 + $0x88] sm:$0xff] }
  0x50   :  { %744 = vmatpush.msra.mxu1 %v2627_v57  ;;  %690 = vmatpush.msra.mxu0 %v2688_v6  ;;  %v4144_v57 = vand.u32 4294901760, %v2730_v49  ;;  %v2989_v6 = vand.u32 4294901760, %v575_v48 }
  0x51   :  { %864 = vmatpush.msra.mxu3 %v2652_v29  ;;  %808 = vmatpush.msra.mxu2 %v4143_v32 }
  0x52   :  { %569 = vmatmul.f32.gmra.mxu2 %v2958_v27  ;;  %746 = vmatpush.msra.mxu1 %v2652_v29  ;;  %4145 = vst [vmem:[#allocation18_spill] sm:$0xff] %v2989_v6  ;;  %v59_v29 = vld [vmem:[%s4045_s1 + $0xf8] sm:$0xff] }
  0x53   :  { %665 = vmatmul.f32.gmra.mxu3 %v2892_v35  ;;  %693 = vmatpush.msra.mxu0 %v2710_v47  ;;  %v4147_v47 = vand.u32 4294901760, %v2753_v44 }
  0x54   :  { %866 = vmatpush.msra.mxu3 %v2675_v34  ;;  %812 = vmatpush.msra.mxu2 %v4144_v57  ;;  %v3115_v57 = vand.u32 4294901760, %v45_v38 }
  0x55   :  { %517 = vmatmul.f32.gmra.mxu1 %v2620_v55  ;;  %696 = vmatpush.msra.mxu0 %v2730_v49  ;;  %v3004_v49 = vand.u32 4294901760, %v59_v29 }
  0x56   :  { %472 = vmatmul.f32.gmra.mxu0 %v2690_v31  ;;  %748 = vmatpush.msra.mxu1 %v2675_v34  ;;  %v583_v34 = vsub.f32 %v2977_v5, %v2992_v58 }
  0x57   :  { %868 = vmatpush.msra.mxu3 %v2702_v26  ;;  %816 = vmatpush.msra.mxu2 %v4147_v47  ;;  %v3026_v42 = vsub.f32 %v59_v29, %v3004_v49  ;;  %v43_v29 = vld [vmem:[%s4045_s1 + $0x78] sm:$0xff] }
  0x58   :  { %750 = vmatpush.msra.mxu1 %v2702_v26  ;;  %699 = vmatpush.msra.mxu0 %v2753_v44  ;;  %v3018_v26 = vand.u32 4294901760, %v57_v40  ;;  %v55_v44 = vld [vmem:[%s4045_s1 + $0xd8] sm:$0xff]  ;;  %v3031_v4 = vand.u32 4294901760, %v583_v34 }
  0x59   :  { %870 = vmatpush.msra.mxu3 %v2725_v14  ;;  %820 = vmatpush.msra.mxu2 %v4148_v8  ;;  %v3038_v45 = vand.u32 4294901760, %v55_v44  ;;  %v4077_v28 = vand.u32 4294901760, %v3026_v42  ;;  %v41_v8 = vld [vmem:[%s4045_s1 + $0x68] sm:$0xff] }
  0x5a   :  { %577 = vmatmul.f32.gmra.mxu2 %v2989_v6  ;;  %702 = vmatpush.msra.mxu0 %v2791_v20  ;;  %v4149_v20 = vand.u32 4294901760, %v2803_v3  ;;  %4150 = vst [vmem:[#allocation20_spill] sm:$0xff] %v3031_v4  ;;  %v3043_v37 = vsub.f32 %v57_v40, %v3018_v26 }
  0x5b   :  { %669 = vmatmul.f32.gmra.mxu3 %v2931_v59  ;;  %752 = vmatpush.msra.mxu1 %v2725_v14  ;;  %v53_v14 = vld [vmem:[%s4045_s1 + $0xc8] sm:$0xff] }
  0x5c   :  { %872 = vmatpush.msra.mxu3 %v2762_v61  ;;  %705 = vmatpush.msra.mxu0 %v2803_v3  ;;  %v3048_v3 = vand.u32 4294901760, %v53_v14  ;;  %v4076_v51 = vand.u32 4294901760, %v3043_v37 }
  0x5d   :  { %521 = vmatmul.f32.gmra.mxu1 %v2690_v31  ;;  %824 = vmatpush.msra.mxu2 %v4149_v20 }
  0x5e   :  { %476 = vmatmul.f32.gmra.mxu0 %v2755_v30  ;;  %754 = vmatpush.msra.mxu1 %v2762_v61  ;;  %v51_v61 = vld [vmem:[%s4045_s1 + $0xb8] sm:$0xff]  ;;  %v972_v25 = vsub.f32 %v3043_v37, %v4076_v51  ;;  %v33_v51 = vld [vmem:[%s4045_s1 + $0x28] sm:$0xff] }
  0x5f   :  { %708 = vmatpush.msra.mxu0 %v2834_v60  ;;  %874 = vmatpush.msra.mxu3 %v2774_v23  ;;  %v3060_v60 = vsub.f32 %v55_v44, %v3038_v45  ;;  %v3135_v44 = vand.u32 4294901760, %v43_v29 }
  0x60   :  { %828 = vmatpush.msra.mxu2 %v644_v11  ;;  %756 = vmatpush.msra.mxu1 %v2774_v23  ;;  %v49_v23 = vld [vmem:[%s4045_s1 + $0xa8] sm:$0xff]  ;;  %v3067_v11 = vand.u32 4294901760, %v51_v61  ;;  %v973_v47 = vand.u32 4294901760, %v972_v25 }
  0x61   :  { %711 = vmatpush.msra.mxu0 %v2852_v10  ;;  %876 = vmatpush.msra.mxu3 %v2805_v39  ;;  %v966_v10 = vsub.f32 %v3026_v42, %v4077_v28  ;;  %v3080_v13 = vand.u32 4294901760, %v49_v23  ;;  %v3214_v28 = vand.u32 4294901760, %v33_v51 }
  0x62   :  { %585 = vmatmul.f32.gmra.mxu2 %v3031_v4  ;;  %758 = vmatpush.msra.mxu1 %v2805_v39  ;;  %v4074_v39 = vand.u32 4294901760, %v3060_v60  ;;  %v3095_v63 = vsub.f32 %v51_v61, %v3067_v11  ;;  %v3141_v61 = vsub.f32 %v45_v38, %v3115_v57 }
  0x63   :  { %832 = vmatpush.msra.mxu2 %v650_v17  ;;  %673 = vmatmul.f32.gmra.mxu3 %v2963_v56  ;;  %v3076_v17 = vsub.f32 %v53_v14, %v3048_v3  ;;  %v3108_v48 = vsub.f32 %v49_v23, %v3080_v13 }
  0x64   :  { %714 = vmatpush.msra.mxu0 %v2871_v9  ;;  %878 = vmatpush.msra.mxu3 %v2828_v19  ;;  %v967_v9 = vand.u32 4294901760, %v966_v10  ;;  %v978_v32 = vsub.f32 %v3060_v60, %v4074_v39  ;;  %v4071_v40 = vand.u32 4294901760, %v3095_v63  ;;  %v3147_v10 = vand.u32 4294901760, %v41_v8  ;;  %v35_v39 = vld [vmem:[%s4045_s1 + $0x38] sm:$0xff] }
  0x65   :  { %525 = vmatmul.f32.gmra.mxu1 %v2755_v30  ;;  %836 = vmatpush.msra.mxu2 %v656_v50  ;;  %v3102_v50 = vand.u32 4294901760, %v47_v1  ;;  %v4073_v20 = vand.u32 4294901760, %v3108_v48 }
  0x66   :  { %899 = vmatpush.msrb.mxu0 %v3004_v49  ;;  %760 = vmatpush.msra.mxu1 %v2828_v19  ;;  %v4072_v19 = vand.u32 4294901760, %v3076_v17  ;;  %v979_v14 = vand.u32 4294901760, %v978_v32  ;;  %v990_v23 = vsub.f32 %v3095_v63, %v4071_v40  ;;  %v3161_v32 = vsub.f32 %v43_v29, %v3135_v44 }
  0x67   :  { %717 = vmatmul.f32.vlgmr.msra.gmra.mxu0 %v2868_v62  ;;  %880 = vmatpush.msra.mxu3 %v2840_v36  ;;  %v3128_v34 = vsub.f32 %v47_v1, %v3102_v50  ;;  %v39_v1 = vld [vmem:[%s4045_s1 + $0x58] sm:$0xff]  ;;  %v4078_v40 = vand.u32 4294901760, %v3141_v61 }
  0x68   :  { %901 = vmatpush.msrb.mxu0 %v3018_v26  ;;  %1078 = vmatpush.msrb.mxu2 %v3026_v42 }
  0x69   :  { %762 = vmatpush.msra.mxu1 %v2840_v36  ;;  %1146 = vmatpush.msrb.mxu3 %v3004_v49  ;;  %v984_v36 = vsub.f32 %v3076_v17, %v4072_v19  ;;  %v4075_v38 = vand.u32 4294901760, %v3128_v34  ;;  %v991_v19 = vand.u32 4294901760, %v990_v23 }
  0x6a   :  { %838 = vmatmul.f32.vlgmr.msra.gmra.mxu2 %v2842_v33  ;;  %903 = vmatpush.msrb.mxu0 %v3038_v45 }
  0x6b   :  { %1081 = vmatpush.msrb.mxu2 %v3043_v37  ;;  %882 = vmatmul.f32.vlgmr.msra.gmra.mxu3 %v2842_v33  ;;  %v985_v25 = vand.u32 4294901760, %v984_v36  ;;  %v3167_v36 = vand.u32 4294901760, %v39_v1  ;;  %v1002_v29 = vsub.f32 %v3128_v34, %v4075_v38 }
  0x6c   :  { %905 = vmatpush.msrb.mxu0 %v3048_v3  ;;  %968 = vmatpush.msrb.mxu1 %v967_v9  ;;  %v996_v9 = vsub.f32 %v3108_v48, %v4073_v20  ;;  %v3173_v20 = vsub.f32 %v41_v8, %v3147_v10 }
  0x6d   :  { %766 = vmatmul.f32.vlgmr.msra.gmra.mxu1 %v2889_v21  ;;  %1084 = vmatpush.msrb.mxu2 %v3060_v60  ;;  %v3193_v38 = vsub.f32 %v39_v1, %v3167_v36  ;;  %v1003_v8 = vand.u32 4294901760, %v1002_v29  ;;  %v31_v1 = vld [vmem:[%s4045_s1 + $0x18] sm:$0xff]  ;;  %v29_v21 = vld [vmem:[%s4045_s1 + $0x8] sm:$0xff] }
  0x6e   :  { %1148 = vmatpush.msrb.mxu3 %v3018_v26  ;;  %907 = vmatpush.msrb.mxu0 %v3067_v11  ;;  %v997_v23 = vand.u32 4294901760, %v996_v9  ;;  %v3199_v9 = vand.u32 4294901760, %v35_v39 }
  0x6f   :  { %722 = vmatmul.f32.gmra.mxu0 %v2914_v52  ;;  %974 = vmatpush.msrb.mxu1 %v973_v47  ;;  %v37_v47 = vld [vmem:[%s4045_s1 + $0x48] sm:$0xff] }
  0x70   :  { %1087 = vmatpush.msrb.mxu2 %v3076_v17  ;;  %1150 = vmatpush.msrb.mxu3 %v3038_v45  ;;  %4151 = vst [vmem:[#allocation21_spill] sm:$0xff] %v3199_v9  ;;  %v3225_v52 = vsub.f32 %v35_v39, %v3199_v9  ;;  %v3240_v39 = vsub.f32 %v33_v51, %v3214_v28 }
  0x71   :  { %909 = vmatpush.msrb.mxu0 %v3080_v13  ;;  %980 = vmatpush.msrb.mxu1 %v979_v14  ;;  %v3179_v14 = vand.u32 4294901760, %v37_v47 }
  0x72   :  { %842 = vmatmul.f32.gmra.mxu2 %v2892_v35  ;;  %1152 = vmatpush.msrb.mxu3 %v3048_v3 }
  0x73   :  { %1090 = vmatpush.msrb.mxu2 %v3095_v63  ;;  %911 = vmatpush.msrb.mxu0 %v3102_v50 }
  0x74   :  { %886 = vmatmul.f32.gmra.mxu3 %v2892_v35  ;;  %986 = vmatpush.msrb.mxu1 %v985_v25  ;;  %v1008_v25 = vsub.f32 %v3141_v61, %v4078_v40  ;;  %v3205_v40 = vsub.f32 %v37_v47, %v3179_v14  ;;  %v81_v47 = vld [vmem:[%s4045_s1 + $0x1a8] sm:$0xff] }
  0x75   :  { %1093 = vmatpush.msrb.mxu2 %v3108_v48  ;;  %1154 = vmatpush.msrb.mxu3 %v3067_v11  ;;  %v3254_v51 = vand.u32 4294901760, %v81_v47 }
  0x76   :  { %913 = vmatpush.msrb.mxu0 %v3115_v57  ;;  %772 = vmatmul.f32.gmra.mxu1 %v2929_v53  ;;  %v1009_v29 = vand.u32 4294901760, %v1008_v25  ;;  %v4153_v53 = vand.u32 4294901760, %v3173_v20  ;;  %v3246_v25 = vand.u32 4294901760, %v29_v21 }
  0x77   :  { %727 = vmatmul.f32.gmra.mxu0 %v2946_v54  ;;  %992 = vmatpush.msrb.mxu1 %v991_v19  ;;  %v4152_v19 = vand.u32 4294901760, %v3161_v32 }
  0x78   :  { %1096 = vmatpush.msrb.mxu2 %v3128_v34  ;;  %1156 = vmatpush.msrb.mxu3 %v3080_v13  ;;  %v3269_v6 = vsub.f32 %v29_v21, %v3246_v25 }
  0x79   :  { %915 = vmatpush.msrb.mxu0 %v3135_v44  ;;  %998 = vmatpush.msrb.mxu1 %v997_v23  ;;  %v1014_v54 = vsub.f32 %v3161_v32, %v4152_v19  ;;  %v1020_v23 = vsub.f32 %v3173_v20, %v4153_v53  ;;  %v3227_v19 = vand.u32 4294901760, %v31_v1 }
  0x7a   :  { %1099 = vmatpush.msrb.mxu2 %v3141_v61  ;;  %1158 = vmatpush.msrb.mxu3 %v3102_v50 }
  0x7b   :  { %917 = vmatpush.msrb.mxu0 %v3147_v10  ;;  %846 = vmatmul.f32.gmra.mxu2 %v2931_v59  ;;  %v1015_v53 = vand.u32 4294901760, %v1014_v54  ;;  %v1021_v4 = vand.u32 4294901760, %v1020_v23  ;;  %v3252_v54 = vsub.f32 %v31_v1, %v3227_v19 }
  0x7c   :  { %1004 = vmatpush.msrb.mxu1 %v1003_v8  ;;  %1102 = vmatpush.msrb.mxu2 %v3161_v32  ;;  %v4154_v8 = vand.u32 4294901760, %v3193_v38 }
  0x7d   :  { %1160 = vmatpush.msrb.mxu3 %v3115_v57  ;;  %919 = vmatpush.msrb.mxu0 %v3167_v36 }
  0x7e   :  { %890 = vmatmul.f32.gmra.mxu3 %v2931_v59  ;;  %1010 = vmatpush.msrb.mxu1 %v1009_v29  ;;  %v1026_v62 = vsub.f32 %v3193_v38, %v4154_v8  ;;  %v79_v29 = vld [vmem:[%s4045_s1 + $0x198] sm:$0xff]  ;;  %v4155_v8 = vand.u32 4294901760, %v3205_v40 }
  0x7f   :  { %1105 = vmatpush.msrb.mxu2 %v3173_v20  ;;  %1162 = vmatpush.msrb.mxu3 %v3135_v44  ;;  %v3271_v35 = vand.u32 4294901760, %v79_v29 }
  0x80   :  { %921 = vmatpush.msrb.mxu0 %v3179_v14  ;;  %778 = vmatmul.f32.gmra.mxu1 %v2961_v18  ;;  %v1032_v59 = vsub.f32 %v3205_v40, %v4155_v8  ;;  %v1027_v23 = vand.u32 4294901760, %v1026_v62  ;;  %v77_v18 = vld [vmem:[%s4045_s1 + $0x188] sm:$0xff]  ;;  %v3282_v62 = vsub.f32 %v81_v47, %v3254_v51  ;;  %v75_v47 = vld [vmem:[%s4045_s1 + $0x178] sm:$0xff] }
  0x81   :  { %732 = vmatmul.f32.gmra.mxu0 %v2977_v5  ;;  %1016 = vmatpush.msrb.mxu1 %v1015_v53  ;;  %v4156_v53 = vand.u32 4294901760, %v3225_v52  ;;  %v3291_v27 = vand.u32 4294901760, %v77_v18 }
  0x82   :  { %1108 = vmatpush.msrb.mxu2 %v3193_v38  ;;  %1164 = vmatpush.msrb.mxu3 %v3147_v10  ;;  %4157 = vst [vmem:[#allocation22_spill] sm:$0xff] %v3282_v62  ;;  %v1033_v21 = vand.u32 4294901760, %v1032_v59  ;;  %v3299_v59 = vsub.f32 %v79_v29, %v3271_v35  ;;  %v73_v29 = vld [vmem:[%s4045_s1 + $0x168] sm:$0xff] }
  0x83   :  { %923 = vmatpush.msrb.mxu0 %v3199_v9  ;;  %1022 = vmatpush.msrb.mxu1 %v1021_v4  ;;  %v1038_v8 = vsub.f32 %v3225_v52, %v4156_v53  ;;  %v4158_v4 = vand.u32 4294901760, %v3240_v39  ;;  %v3316_v53 = vsub.f32 %v77_v18, %v3291_v27  ;;  %v3328_v18 = vand.u32 4294901760, %v73_v29 }
  0x84   :  { %1111 = vmatpush.msrb.mxu2 %v3205_v40  ;;  %1166 = vmatpush.msrb.mxu3 %v3167_v36  ;;  %v4102_v46 = vand.u32 4294901760, %v3299_v59 }
  0x85   :  { %925 = vmatpush.msrb.mxu0 %v3214_v28  ;;  %850 = vmatmul.f32.gmra.mxu2 %v2963_v56  ;;  %v1044_v5 = vsub.f32 %v3240_v39, %v4158_v4  ;;  %v1039_v1 = vand.u32 4294901760, %v1038_v8  ;;  %v4159_v4 = vand.u32 4294901760, %v3252_v54 }
  0x86   :  { %1028 = vmatpush.msrb.mxu1 %v1027_v23  ;;  %1114 = vmatpush.msrb.mxu2 %v3225_v52  ;;  %v3308_v23 = vand.u32 4294901760, %v75_v47 }
  0x87   :  { %1168 = vmatpush.msrb.mxu3 %v3179_v14  ;;  %927 = vmatpush.msrb.mxu0 %v3227_v19  ;;  %v1050_v33 = vsub.f32 %v3252_v54, %v4159_v4  ;;  %v1045_v8 = vand.u32 4294901760, %v1044_v5 }
  0x88   :  { %894 = vmatmul.f32.gmra.mxu3 %v2963_v56  ;;  %1034 = vmatpush.msrb.mxu1 %v1033_v21  ;;  %v4160_v21 = vand.u32 4294901760, %v3269_v6 }
  0x89   :  { %1117 = vmatpush.msrb.mxu2 %v3240_v39  ;;  %1170 = vmatpush.msrb.mxu3 %v3199_v9  ;;  %v1051_v56 = vand.u32 4294901760, %v1050_v33  ;;  %v4161_v9 = vand.u32 4294901760, %v3282_v62  ;;  %v1411_v33 = vand.u32 4294901760, %v3316_v53 }
  0x8a   :  { %929 = vmatpush.msrb.mxu0 %v3246_v25  ;;  %784 = vmatmul.f32.gmra.mxu1 %v2992_v58  ;;  %v1056_v4 = vsub.f32 %v3269_v6, %v4160_v21  ;;  %v71_v58 = vld [vmem:[%s4045_s1 + $0x158] sm:$0xff]  ;;  %v3336_v21 = vsub.f32 %v75_v47, %v3308_v23  ;;  %v4163_v47 = vand.u32 4294901760, %v3043_v37  ;;  %v4165_v37 = vand.u32 4294901760, %v3060_v60 }
  0x8b   :  { %935 = vmatmul.f32.vlgmr.msrb.gmra.mxu0 %v2672_v41  ;;  %1040 = vmatpush.msrb.mxu1 %v1039_v1  ;;  %v1400_v5 = vsub.f32 %v3282_v62, %v4161_v9  ;;  %v4162_v41 = vand.u32 4294901760, %v3026_v42  ;;  %v1406_v1 = vsub.f32 %v3299_v59, %v4102_v46  ;;  %v3346_v62 = vand.u32 4294901760, %v71_v58  ;;  %v69_v46 = vld [vmem:[%s4045_s1 + $0x148] sm:$0xff] }
  0x8c   :  { %1120 = vmatpush.msrb.mxu2 %v3252_v54  ;;  %1172 = vmatpush.msrb.mxu3 %v3214_v28  ;;  %v1057_v9 = vand.u32 4294901760, %v1056_v4  ;;  %v4167_v4 = vand.u32 4294901760, %v3076_v17 }
  0x8d   :  { %1205 = vmatpush.msra.mxu0 %v4162_v41  ;;  %1046 = vmatpush.msrb.mxu1 %v1045_v8  ;;  %v1401_v42 = vand.u32 4294901760, %v1400_v5  ;;  %v3351_v8 = vsub.f32 %v73_v29, %v3328_v18  ;;  %v4164_v41 = vld [vmem:[#allocation2_spill] sm:$0xff]  ;;  %v4166_v29 = vld [vmem:[#allocation3_spill] sm:$0xff]  ;;  %v1407_v5 = vand.u32 4294901760, %v1406_v1  ;;  %v4169_v1 = vand.u32 4294901760, %v3095_v63 }
  0x8e   :  { %1123 = vmatpush.msrb.mxu2 %v3269_v6  ;;  %1174 = vmatpush.msrb.mxu3 %v3227_v19 }
  0x8f   :  { %1209 = vmatpush.msra.mxu0 %v4163_v47  ;;  %1052 = vmatpush.msrb.mxu1 %v1051_v56  ;;  %v1412_v56 = vsub.f32 %v3316_v53, %v1411_v33  ;;  %v3367_v47 = vsub.f32 %v71_v58, %v3346_v62  ;;  %v1423_v60 = vand.u32 4294901760, %v3351_v8 }
  0x90   :  { %1126 = vmatmul.f32.vlgmr.msrb.gmra.mxu2 %v4164_v41  ;;  %1176 = vmatpush.msrb.mxu3 %v3246_v25  ;;  %v67_v41 = vld [vmem:[%s4045_s1 + $0x138] sm:$0xff] }
  0x91   :  { %1338 = vmatpush.msra.mxu2 %v3254_v51  ;;  %1213 = vmatpush.msra.mxu0 %v4165_v37  ;;  %v3375_v37 = vand.u32 4294901760, %v69_v46  ;;  %v3385_v17 = vand.u32 4294901760, %v67_v41  ;;  %v1424_v63 = vsub.f32 %v3351_v8, %v1423_v60 }
  0x92   :  { %1058 = vmatpush.msrb.mxu1 %v1057_v9  ;;  %1180 = vmatmul.f32.vlgmr.msrb.gmra.mxu3 %v4166_v29  ;;  %v4168_v9 = vand.u32 4294901760, %v3336_v21  ;;  %v4170_v29 = vand.u32 4294901760, %v3108_v48 }
  0x93   :  { %1402 = vmatpush.msra.mxu3 %v1401_v42  ;;  %1217 = vmatpush.msra.mxu0 %v4167_v4  ;;  %v1413_v42 = vand.u32 4294901760, %v1412_v56  ;;  %v1429_v4 = vand.u32 4294901760, %v3367_v47  ;;  %v3399_v56 = vsub.f32 %v69_v46, %v3375_v37  ;;  %v4172_v46 = vand.u32 4294901760, %v3141_v61 }
  0x94   :  { %1340 = vmatpush.msra.mxu2 %v3271_v35  ;;  %943 = vmatmul.f32.gmra.mxu0 %v2742_v15  ;;  %v1418_v58 = vsub.f32 %v3336_v21, %v4168_v9  ;;  %v65_v15 = vld [vmem:[%s4045_s1 + $0x128] sm:$0xff]  ;;  %v3406_v9 = vsub.f32 %v67_v41, %v3385_v17 }
  0x95   :  { %1060 = vmatmul.f32.vlgmr.msrb.gmra.mxu1 %v2564_v2  ;;  %1221 = vmatpush.msra.mxu0 %v4169_v1  ;;  %v3408_v48 = vand.u32 4294901760, %v65_v15  ;;  %v63_v1 = vld [vmem:[%s4045_s1 + $0x118] sm:$0xff]  ;;  %v61_v41 = vld [vmem:[%s4045_s1 + $0x108] sm:$0xff] }
  0x96   :  { %1284 = vmatpush.msra.mxu1 %v3004_v49  ;;  %1408 = vmatpush.msra.mxu3 %v1407_v5  ;;  %v1419_v49 = vand.u32 4294901760, %v1418_v58  ;;  %v4171_v5 = vand.u32 4294901760, %v3128_v34  ;;  %v1435_v34 = vand.u32 4294901760, %v3399_v56  ;;  %v4173_v58 = vld [vmem:[#allocation4_spill] sm:$0xff] }
  0x97   :  { %1342 = vmatpush.msra.mxu2 %v3291_v27  ;;  %1225 = vmatpush.msra.mxu0 %v4170_v29  ;;  %v3432_v61 = vsub.f32 %v65_v15, %v3408_v48  ;;  %v3436_v29 = vand.u32 4294901760, %v61_v41 }
  0x98   :  { %1286 = vmatpush.msra.mxu1 %v3018_v26  ;;  %1131 = vmatmul.f32.gmra.mxu2 %v2650_v12  ;;  %v1430_v12 = vsub.f32 %v3367_v47, %v1429_v4  ;;  %v1425_v26 = vand.u32 4294901760, %v1424_v63  ;;  %v1436_v63 = vsub.f32 %v3399_v56, %v1435_v34 }
  0x99   :  { %1414 = vmatpush.msra.mxu3 %v1413_v42  ;;  %1229 = vmatpush.msra.mxu0 %v4171_v5  ;;  %v1447_v5 = vand.u32 4294901760, %v3432_v61 }
  0x9a   :  { %1288 = vmatpush.msra.mxu1 %v3038_v45  ;;  %1344 = vmatpush.msra.mxu2 %v3308_v23  ;;  %v3426_v45 = vand.u32 4294901760, %v63_v1  ;;  %v1431_v42 = vand.u32 4294901760, %v1430_v12  ;;  %v4177_v12 = vand.u32 4294901760, %v3205_v40 }
  0x9b   :  { %1186 = vmatmul.f32.gmra.mxu3 %v2685_v7  ;;  %1233 = vmatpush.msra.mxu0 %v4172_v46  ;;  %v1441_v7 = vand.u32 4294901760, %v3406_v9 }
  0x9c   :  { %1290 = vmatpush.msra.mxu1 %v3048_v3  ;;  %1420 = vmatpush.msra.mxu3 %v1419_v49  ;;  %v4174_v3 = vand.u32 4294901760, %v3161_v32  ;;  %v4175_v49 = vand.u32 4294901760, %v3173_v20  ;;  %v1437_v20 = vand.u32 4294901760, %v1436_v63 }
  0x9d   :  { %951 = vmatmul.f32.gmra.mxu0 %v4173_v58  ;;  %1064 = vmatmul.f32.gmra.mxu1 %v2620_v55  ;;  %v1442_v32 = vsub.f32 %v3406_v9, %v1441_v7 }
  0x9e   :  { %1292 = vmatpush.msra.mxu1 %v3067_v11  ;;  %1346 = vmatpush.msra.mxu2 %v3328_v18  ;;  %v3448_v11 = vsub.f32 %v63_v1, %v3426_v45  ;;  %v4176_v1 = vand.u32 4294901760, %v3193_v38  ;;  %v1448_v38 = vsub.f32 %v3432_v61, %v1447_v5 }
  0x9f   :  { %1237 = vmatpush.msra.mxu0 %v4174_v3  ;;  %1426 = vmatpush.msra.mxu3 %v1425_v26  ;;  %v4185_v3 = vld [vmem:[#allocation10_spill] sm:$0xff] }
  0xa0   :  { %1294 = vmatpush.msra.mxu1 %v3080_v13  ;;  %1348 = vmatpush.msra.mxu2 %v3346_v62  ;;  %v3445_v15 = vpop.f32.mrf.mxu0  ;;  %v3459_v13 = vsub.f32 %v61_v41, %v3436_v29  ;;  %v4180_v41 = vand.u32 4294901760, %v3252_v54  ;;  %v4182_v54 = vld [vmem:[#allocation21_spill] sm:$0xff] }
  0xa1   :  { %1241 = vmatpush.msra.mxu0 %v4175_v49  ;;  %1136 = vmatmul.f32.gmra.mxu2 %v2718_v24  ;;  %v1453_v24 = vand.u32 4294901760, %v3448_v11  ;;  %v4186_v49 = vld [vmem:[#allocation5_spill] sm:$0xff] }
  0xa2   :  { %1296 = vmatpush.msra.mxu1 %v3102_v50  ;;  %1432 = vmatpush.msra.mxu3 %v1431_v42  ;;  %v1443_v50 = vand.u32 4294901760, %v1442_v32 }
  0xa3   :  { %1245 = vmatpush.msra.mxu0 %v4176_v1  ;;  %1192 = vmatmul.f32.gmra.mxu3 %v2748_v0  ;;  %v1459_v0 = vand.u32 4294901760, %v3459_v13  ;;  %v1454_v40 = vsub.f32 %v3448_v11, %v1453_v24  ;;  %v4190_v1 = vld [vmem:[#allocation8_spill] sm:$0xff] }
  0xa4   :  { %1298 = vmatpush.msra.mxu1 %v3115_v57  ;;  %1350 = vmatpush.msra.mxu2 %v3375_v37  ;;  %v4178_v57 = vand.u32 4294901760, %v3225_v52 }
  0xa5   :  { %1249 = vmatpush.msra.mxu0 %v4177_v12  ;;  %1068 = vmatmul.f32.gmra.mxu1 %v2690_v31  ;;  %v1460_v52 = vsub.f32 %v3459_v13, %v1459_v0 }
  0xa6   :  { %959 = vmatmul.f32.gmra.mxu0 %v2865_v22  ;;  %1300 = vmatpush.msra.mxu1 %v3135_v44  ;;  %v4179_v22 = vand.u32 4294901760, %v3240_v39  ;;  %v1449_v44 = vand.u32 4294901760, %v1448_v38 }
  0xa7   :  { %1438 = vmatpush.msra.mxu3 %v1437_v20  ;;  %1253 = vmatpush.msra.mxu0 %v4178_v57  ;;  %v1461_v58 = vand.u32 4294901760, %v1460_v52  ;;  %v4199_v52 = vld [vmem:[#allocation13_spill] sm:$0xff] }
  0xa8   :  { %1352 = vmatpush.msra.mxu2 %v3385_v17  ;;  %1302 = vmatpush.msra.mxu1 %v3147_v10  ;;  %v3483_v46 = vpop.f32.mrf.mxu1 }
  0xa9   :  { %1257 = vmatpush.msra.mxu0 %v4179_v22  ;;  %1444 = vmatpush.msra.mxu3 %v1443_v50  ;;  %v3487_v26 = vpop.f32.mrf.mxu0 }
  0xaa   :  { %1141 = vmatmul.f32.gmra.mxu2 %v2780_v16  ;;  %1304 = vmatpush.msra.mxu1 %v3167_v36  ;;  %v3494_v10 = vpop.f32.mrf.mxu2  ;;  %v3499_v39 = vpop.f32.mrf.mxu3  ;;  %v1455_v16 = vand.u32 4294901760, %v1454_v40  ;;  %v4181_v36 = vand.u32 4294901760, %v3269_v6  ;;  %v4198_v40 = vld [vmem:[#allocation11_spill] sm:$0xff] }
  0xab   :  { %1354 = vmatpush.msra.mxu2 %v3408_v48  ;;  %1261 = vmatpush.msra.mxu0 %v4180_v41 }
  0xac   :  { %1198 = vmatmul.f32.gmra.mxu3 %v2817_v43  ;;  %1306 = vmatpush.msra.mxu1 %v3179_v14  ;;  %v4183_v43 = vld [vmem:[#allocation22_spill] sm:$0xff] }
  0xad   :  { %1450 = vmatpush.msra.mxu3 %v1449_v44  ;;  %1265 = vmatpush.msra.mxu0 %v4181_v36  ;;  %v4184_v14 = vand.u32 4294901760, %v4183_v43 }
  0xae   :  { %1356 = vmatpush.msra.mxu2 %v3426_v45  ;;  %1072 = vmatmul.f32.gmra.mxu1 %v2755_v30 }
  0xaf   :  { %1267 = vmatmul.f32.vlgmr.msra.gmra.mxu0 %v2564_v2  ;;  %1308 = vmatpush.msra.mxu1 %v4182_v54 }
  0xb0   :  { %1456 = vmatpush.msra.mxu3 %v1455_v16  ;;  %1358 = vmatpush.msra.mxu2 %v3436_v29 }
  0xb1   :  { %1310 = vmatpush.msra.mxu1 %v3214_v28  ;;  %v3513_v42 = vpop.f32.mrf.mxu0  ;;  %v3515_v6 = vpop.f32.mrf.mxu1  ;;  %1487 = vmatpush.msrb.mxu0 %v4183_v43  ;;  %v4187_v28 = vand.u32 4294901760, %v3299_v59 }
  0xb2   :  { %1599 = vmatpush.msrb.mxu2 %v4184_v14  ;;  %1462 = vmatpush.msra.mxu3 %v1461_v58  ;;  %v3518_v63 = vpop.f32.mrf.mxu2  ;;  %v263_v50 = vadd.f32 %v3515_v6, %v3487_v26  ;;  %v4200_v6 = vld [vmem:[#allocation15_spill] sm:$0xff] }
  0xb3   :  { %1364 = vmatmul.f32.vlgmr.msra.gmra.mxu2 %v4185_v3  ;;  %1312 = vmatpush.msra.mxu1 %v3227_v19 }
  0xb4   :  { %1464 = vmatmul.f32.vlgmr.msra.gmra.mxu3 %v4186_v49  ;;  %1603 = vmatpush.msrb.mxu2 %v4187_v28  ;;  %v330_v41 = vadd.f32 %v3518_v63, %v263_v50  ;;  %v4201_v28 = vld [vmem:[#allocation17_spill] sm:$0xff] }
  0xb5   :  { %1314 = vmatpush.msra.mxu1 %v3246_v25  ;;  %1663 = vmatpush.msrb.mxu3 %v3254_v51  ;;  %v3527_v32 = vpop.f32.mrf.mxu3  ;;  %v4188_v25 = vld [vmem:[#allocation14_spill] sm:$0xff] }
  0xb6   :  { %1316 = vmatmul.f32.vlgmr.msra.gmra.mxu1 %v2564_v2  ;;  %1490 = vmatpush.msrb.mxu0 %v3299_v59  ;;  %v4189_v59 = vand.u32 4294901760, %v3336_v21  ;;  %v385_v54 = vadd.f32 %v3527_v32, %v330_v41 }
  0xb7   :  { %1271 = vmatmul.f32.gmra.mxu0 %v2620_v55  ;;  %1545 = vmatpush.msrb.mxu1 %v3254_v51 }
  0xb8   :  { %1665 = vmatpush.msrb.mxu3 %v3271_v35  ;;  %1607 = vmatpush.msrb.mxu2 %v1411_v33 }
  0xb9   :  { %1547 = vmatpush.msrb.mxu1 %v3271_v35  ;;  %1493 = vmatpush.msrb.mxu0 %v3316_v53  ;;  %v266_v19 = vpop.f32.mrf.mxu1 }
  0xba   :  { %1667 = vmatpush.msrb.mxu3 %v3291_v27  ;;  %v3540_v2 = vpop.f32.mrf.mxu0  ;;  %1611 = vmatpush.msrb.mxu2 %v4189_v59 }
  0xbb   :  { %1372 = vmatmul.f32.gmra.mxu2 %v4188_v25  ;;  %1549 = vmatpush.msrb.mxu1 %v3291_v27  ;;  %v334_v51 = vpop.f32.mrf.mxu2  ;;  %v4191_v27 = vld [vmem:[#allocation18_spill] sm:$0xff] }
  0xbc   :  { %1468 = vmatmul.f32.gmra.mxu3 %v4190_v1  ;;  %1496 = vmatpush.msrb.mxu0 %v3336_v21 }
  0xbd   :  { %1669 = vmatpush.msrb.mxu3 %v3308_v23  ;;  %1615 = vmatpush.msrb.mxu2 %v1423_v60  ;;  %v390_v35 = vpop.f32.mrf.mxu3 }
  0xbe   :  { %1320 = vmatmul.f32.gmra.mxu1 %v2620_v55  ;;  %1499 = vmatpush.msrb.mxu0 %v3351_v8  ;;  %v4194_v8 = vld [vmem:[#allocation16_spill] sm:$0xff] }
  0xbf   :  { %1275 = vmatmul.f32.gmra.mxu0 %v2690_v31  ;;  %1551 = vmatpush.msrb.mxu1 %v3308_v23  ;;  %v4192_v23 = vld [vmem:[#allocation12_spill] sm:$0xff] }
  0xc0   :  { %1671 = vmatpush.msrb.mxu3 %v3328_v18  ;;  %1619 = vmatpush.msrb.mxu2 %v1429_v4 }
  0xc1   :  { %1553 = vmatpush.msrb.mxu1 %v3328_v18  ;;  %1502 = vmatpush.msrb.mxu0 %v3367_v47 }
  0xc2   :  { %1673 = vmatpush.msrb.mxu3 %v3346_v62  ;;  %v270_v55 = vpop.f32.mrf.mxu1  ;;  %1623 = vmatpush.msrb.mxu2 %v1435_v34  ;;  %v4196_v34 = vld [vmem:[#allocation7_spill] sm:$0xff] }
  0xc3   :  { %1380 = vmatmul.f32.gmra.mxu2 %v4191_v27  ;;  %1505 = vmatpush.msrb.mxu0 %v3399_v56  ;;  %v465_v53 = vpop.f32.mrf.mxu0  ;;  %v4202_v27 = vld [vmem:[#allocation19_spill] sm:$0xff] }
  0xc4   :  { %1472 = vmatmul.f32.gmra.mxu3 %v4192_v23  ;;  %1555 = vmatpush.msrb.mxu1 %v3346_v62  ;;  %v339_v21 = vpop.f32.mrf.mxu2  ;;  %v4193_v62 = vld [vmem:[#allocation20_spill] sm:$0xff] }
  0xc5   :  { %1675 = vmatpush.msrb.mxu3 %v3375_v37  ;;  %1508 = vmatpush.msrb.mxu0 %v3406_v9 }
  0xc6   :  { %1324 = vmatmul.f32.gmra.mxu1 %v2690_v31  ;;  %1627 = vmatpush.msrb.mxu2 %v1441_v7  ;;  %v396_v18 = vpop.f32.mrf.mxu3 }
  0xc7   :  { %1279 = vmatmul.f32.gmra.mxu0 %v2755_v30  ;;  %1557 = vmatpush.msrb.mxu1 %v3375_v37  ;;  %v267_v37 = vadd.f32 %v266_v19, %v3513_v42 }
  0xc8   :  { %1511 = vmatpush.msrb.mxu0 %v3432_v61  ;;  %1677 = vmatpush.msrb.mxu3 %v3385_v17 }
  0xc9   :  { %1631 = vmatpush.msrb.mxu2 %v1447_v5  ;;  %1559 = vmatpush.msrb.mxu1 %v3385_v17  ;;  %v4195_v17 = vld [vmem:[#allocation6_spill] sm:$0xff]  ;;  %v335_v56 = vadd.f32 %v334_v51, %v267_v37 }
  0xca   :  { %1514 = vmatpush.msrb.mxu0 %v3448_v11  ;;  %v514_v31 = vpop.f32.mrf.mxu1  ;;  %1679 = vmatpush.msrb.mxu3 %v3408_v48  ;;  %v271_v11 = vadd.f32 %v270_v55, %v3540_v2 }
  0xcb   :  { %1388 = vmatmul.f32.gmra.mxu2 %v4193_v62  ;;  %v469_v33 = vpop.f32.mrf.mxu0  ;;  %1561 = vmatpush.msrb.mxu1 %v3408_v48  ;;  %v391_v61 = vadd.f32 %v390_v35, %v335_v56 }
  0xcc   :  { %1635 = vmatpush.msrb.mxu2 %v1453_v24  ;;  %1476 = vmatmul.f32.gmra.mxu3 %v4194_v8  ;;  %v340_v20 = vadd.f32 %v339_v21, %v271_v11  ;;  %v470_v42 = vadd.f32 %v469_v33, %v385_v54 }
  0xcd   :  { %1517 = vmatpush.msrb.mxu0 %v3459_v13  ;;  %v562_v47 = vpop.f32.mrf.mxu2  ;;  %1681 = vmatpush.msrb.mxu3 %v3426_v45 }
  0xce   :  { %1328 = vmatmul.f32.gmra.mxu1 %v2755_v30  ;;  %1639 = vmatpush.msrb.mxu2 %v1459_v0  ;;  %v662_v60 = vpop.f32.mrf.mxu3  ;;  %v259_v30 = vadd.f32 %v3483_v46, %v3445_v15  ;;  %v397_v22 = vadd.f32 %v396_v18, %v340_v20 }
  0xcf   :  { %1520 = vmatmul.f32.vlgmr.msrb.gmra.mxu0 %v4195_v17  ;;  %1563 = vmatpush.msrb.mxu1 %v3426_v45 }
  0xd0   :  { %1683 = vmatpush.msrb.mxu3 %v3436_v29  ;;  %v325_v45 = vadd.f32 %v3494_v10, %v259_v30 }
  0xd1   :  { %1565 = vmatpush.msrb.mxu1 %v3436_v29  ;;  %v4197_v29 = vld [vmem:[#allocation9_spill] sm:$0xff] }
  0xd2   :  { %v518_v4 = vpop.f32.mrf.mxu1  ;;  %v379_v15 = vadd.f32 %v3499_v39, %v325_v45 }
  0xd3   :  { %1641 = vmatmul.f32.vlgmr.msrb.gmra.mxu2 %v4186_v49  ;;  %v473_v9 = vpop.f32.mrf.mxu0  ;;  %v519_v19 = vadd.f32 %v518_v4, %v470_v42  ;;  %v1720_v42 = vld [vmem:[%s4047_s2 + $0x58] sm:$0xff] }
  0xd4   :  { %1685 = vmatmul.f32.vlgmr.msrb.gmra.mxu3 %v4186_v49  ;;  %v474_v5 = vadd.f32 %v473_v9, %v391_v61  ;;  %v466_v0 = vadd.f32 %v465_v53, %v379_v15 }
  0xd5   :  { %v570_v48 = vpop.f32.mrf.mxu2 }
  0xd6   :  { %1569 = vmatmul.f32.vlgmr.msrb.gmra.mxu1 %v4196_v34  ;;  %v666_v7 = vpop.f32.mrf.mxu3  ;;  %v515_v44 = vadd.f32 %v514_v31, %v466_v0  ;;  %v571_v32 = vadd.f32 %v570_v48, %v519_v19  ;;  %v1719_v19 = vld [vmem:[%s4047_s2 + $0x50] sm:$0xff] }
  0xd7   :  { %1525 = vmatmul.f32.gmra.mxu0 %v4197_v29 }
  0xd8   :  { %v563_v26 = vadd.f32 %v562_v47, %v515_v44 }
  0xda   :  { %v522_v13 = vpop.f32.mrf.mxu1  ;;  %v663_v49 = vadd.f32 %v662_v60, %v563_v26  ;;  %v1721_v26 = vld [vmem:[%s4047_s2 + $0x60] sm:$0xff] }
  0xdb   :  { %1645 = vmatmul.f32.gmra.mxu2 %v4190_v1  ;;  %v477_v24 = vpop.f32.mrf.mxu0  ;;  %v523_v12 = vadd.f32 %v522_v13, %v474_v5 }
  0xdc   :  { %1689 = vmatmul.f32.gmra.mxu3 %v4190_v1  ;;  %v478_v39 = vadd.f32 %v477_v24, %v397_v22 }
  0xdd   :  { %v578_v38 = vpop.f32.mrf.mxu2 }
  0xde   :  { %v579_v57 = vadd.f32 %v578_v38, %v523_v12  ;;  %1575 = vmatmul.f32.gmra.mxu1 %v4198_v40  ;;  %v670_v46 = vpop.f32.mrf.mxu3  ;;  %v1724_v38 = vld [vmem:[%s4047_s2 + $0x78] sm:$0xff] }
  0xdf   :  { %1530 = vmatmul.f32.gmra.mxu0 %v4199_v52  ;;  %v3640_v0 = vand.u32 4294901760, %v1724_v38 }
  0xe0   :  { %v671_v10 = vadd.f32 %v670_v46, %v579_v57  ;;  %v1723_v57 = vld [vmem:[%s4047_s2 + $0x70] sm:$0xff] }
  0xe1   :  { %v1791_v22 = vsub.f32 %v1724_v38, %v3640_v0  ;;  %v3650_v44 = vand.u32 4294901760, %v1723_v57  ;;  %1973 = vmatpush.msra.mxu3 %v3640_v0  ;;  %1726 = vmatpush.msra.mxu0 %v3640_v0 }
  0xe2   :  { %v526_v16 = vpop.f32.mrf.mxu1 }
  0xe3   :  { %1649 = vmatmul.f32.gmra.mxu2 %v4192_v23  ;;  %v527_v36 = vadd.f32 %v526_v16, %v478_v39  ;;  %v3659_v41 = vand.u32 4294901760, %v1791_v22  ;;  %v1797_v39 = vsub.f32 %v1723_v57, %v3650_v44  ;;  %1975 = vmatpush.msra.mxu3 %v3650_v44 }
  0xe4   :  { %v718_v58 = vpop.f32.mrf.mxu0  ;;  %1693 = vmatmul.f32.gmra.mxu3 %v4192_v23  ;;  %v667_v23 = vadd.f32 %v666_v7, %v571_v32  ;;  %1905 = vmatpush.msra.mxu2 %v1791_v22  ;;  %v3698_v32 = vand.u32 4294901760, %v1719_v19 }
  0xe5   :  { %v586_v43 = vpop.f32.mrf.mxu2  ;;  %v719_v25 = vadd.f32 %v718_v58, %v663_v49  ;;  %1728 = vmatpush.msra.mxu0 %v3650_v44  ;;  %v1793_v58 = vsub.f32 %v1791_v22, %v3659_v41  ;;  %v3672_v54 = vand.u32 4294901760, %v1797_v39 }
  0xe6   :  { %v587_v14 = vadd.f32 %v586_v43, %v527_v36  ;;  %1581 = vmatmul.f32.gmra.mxu1 %v4200_v6  ;;  %v674_v3 = vpop.f32.mrf.mxu3  ;;  %1908 = vmatpush.msra.mxu2 %v1797_v39 }
  0xe7   :  { %1535 = vmatmul.f32.gmra.mxu0 %v4201_v28  ;;  %v1794_v6 = vand.u32 4294901760, %v1793_v58 }
  0xe8   :  { %v675_v63 = vadd.f32 %v674_v3, %v587_v14  ;;  %v3675_v14 = vand.u32 4294901760, %v1721_v26  ;;  %v1799_v3 = vsub.f32 %v1797_v39, %v3672_v54  ;;  %v1714_v39 = vld [vmem:[%s4047_s2 + $0x28] sm:$0xff] }
  0xe9   :  { %1795 = vmatpush.msra.mxu1 %v1794_v6 }
  0xea   :  { %v767_v2 = vpop.f32.mrf.mxu1  ;;  %v1809_v28 = vsub.f32 %v1721_v26, %v3675_v14 }
  0xeb   :  { %1653 = vmatmul.f32.gmra.mxu2 %v4194_v8  ;;  %v768_v51 = vadd.f32 %v767_v2, %v719_v25  ;;  %v1800_v2 = vand.u32 4294901760, %v1799_v3 }
  0xec   :  { %v723_v59 = vpop.f32.mrf.mxu0  ;;  %1697 = vmatmul.f32.gmra.mxu3 %v4194_v8 }
  0xed   :  { %v839_v1 = vpop.f32.mrf.mxu2  ;;  %v724_v21 = vadd.f32 %v723_v59, %v667_v23  ;;  %1801 = vmatpush.msra.mxu1 %v1800_v2 }
  0xee   :  { %v840_v35 = vadd.f32 %v839_v1, %v768_v51  ;;  %1587 = vmatmul.f32.gmra.mxu1 %v4202_v27  ;;  %v883_v55 = vpop.f32.mrf.mxu3  ;;  %v3696_v51 = vand.u32 4294901760, %v1809_v28  ;;  %v1718_v27 = vld [vmem:[%s4047_s2 + $0x48] sm:$0xff] }
  0xf0   :  { %v3619_v53 = vadd.f32 %v883_v55, %v840_v35 }
  0xf3   :  { %v773_v18 = vpop.f32.mrf.mxu1 }
  0xf4   :  { %v728_v62 = vpop.f32.mrf.mxu0  ;;  %v774_v31 = vadd.f32 %v773_v18, %v724_v21  ;;  %v1811_v21 = vsub.f32 %v1809_v28, %v3696_v51  ;;  %v1821_v18 = vsub.f32 %v1719_v19, %v3698_v32  ;;  %v1713_v19 = vld [vmem:[%s4047_s2 + $0x20] sm:$0xff] }
  0xf5   :  { %v843_v33 = vpop.f32.mrf.mxu2  ;;  %v729_v47 = vadd.f32 %v728_v62, %v671_v10  ;;  %v1722_v10 = vld [vmem:[%s4047_s2 + $0x68] sm:$0xff]  ;;  %v3712_v62 = vand.u32 4294901760, %v1718_v27 }
  0xf6   :  { %v844_v60 = vadd.f32 %v843_v33, %v774_v31  ;;  %v3662_v16 = vand.u32 4294901760, %v1722_v10  ;;  %v1717_v33 = vld [vmem:[%s4047_s2 + $0x40] sm:$0xff] }
  0xf7   :  { %v887_v37 = vpop.f32.mrf.mxu3 }
  0xf8   :  { %v3621_v17 = vadd.f32 %v887_v37, %v844_v60  ;;  %v1803_v43 = vsub.f32 %v1722_v10, %v3662_v16  ;;  %1977 = vmatpush.msra.mxu3 %v3662_v16  ;;  %1730 = vmatpush.msra.mxu0 %v3662_v16  ;;  %v1812_v60 = vand.u32 4294901760, %v1811_v21  ;;  %v3722_v37 = vand.u32 4294901760, %v1821_v18 }
  0xfa   :  { %4203 = vst [vmem:[#allocation2_spill] sm:$0xff] %v3621_v17  ;;  %v3683_v49 = vand.u32 4294901760, %v1803_v43  ;;  %1911 = vmatpush.msra.mxu2 %v1803_v43  ;;  %1979 = vmatpush.msra.mxu3 %v3675_v14 }
  0xfb   :  { %1732 = vmatpush.msra.mxu0 %v3675_v14 }
  0xfc   :  { %v1805_v59 = vsub.f32 %v1803_v43, %v3683_v49  ;;  %1914 = vmatpush.msra.mxu2 %v1809_v28  ;;  %v3766_v28 = vand.u32 4294901760, %v1714_v39 }
  0xfd   :  { %v779_v4 = vpop.f32.mrf.mxu1 }
  0xfe   :  { %v733_v8 = vpop.f32.mrf.mxu0  ;;  %v780_v30 = vadd.f32 %v779_v4, %v729_v47  ;;  %v847_v56 = vpop.f32.mrf.mxu2  ;;  %v1806_v23 = vand.u32 4294901760, %v1805_v59  ;;  %v1827_v4 = vsub.f32 %v1718_v27, %v3712_v62  ;;  %v1851_v21 = vsub.f32 %v1714_v39, %v3766_v28  ;;  %v1710_v39 = vld [vmem:[%s4047_s2 + $0x8] sm:$0xff] }
  0xff   :  { %v734_v9 = vadd.f32 %v733_v8, %v675_v63  ;;  %v3687_v63 = vand.u32 4294901760, %v1720_v42  ;;  %v3725_v8 = vand.u32 4294901760, %v1717_v33 }
 0x100   :  { %v848_v48 = vadd.f32 %v847_v56, %v780_v30  ;;  %1807 = vmatpush.msra.mxu1 %v1806_v23  ;;  %v1716_v56 = vld [vmem:[%s4047_s2 + $0x38] sm:$0xff] }
 0x101   :  { %v891_v34 = vpop.f32.mrf.mxu3  ;;  %v1815_v35 = vsub.f32 %v1720_v42, %v3687_v63  ;;  %1981 = vmatpush.msra.mxu3 %v3687_v63  ;;  %1734 = vmatpush.msra.mxu0 %v3687_v63 }
 0x102   :  { %v3623_v45 = vadd.f32 %v891_v34, %v848_v48  ;;  %1813 = vmatpush.msra.mxu1 %v1812_v60  ;;  %v3734_v48 = vand.u32 4294901760, %v1827_v4  ;;  %v1833_v34 = vsub.f32 %v1717_v33, %v3725_v8 }
 0x103   :  { %v3714_v31 = vand.u32 4294901760, %v1815_v35  ;;  %1917 = vmatpush.msra.mxu2 %v1815_v35  ;;  %1983 = vmatpush.msra.mxu3 %v3698_v32 }
 0x104   :  { %4204 = vst [vmem:[#allocation3_spill] sm:$0xff] %v3623_v45  ;;  %1736 = vmatpush.msra.mxu0 %v3698_v32  ;;  %v3745_v38 = vand.u32 4294901760, %v1833_v34 }
 0x105   :  { %v1817_v30 = vsub.f32 %v1815_v35, %v3714_v31  ;;  %1920 = vmatpush.msra.mxu2 %v1821_v18  ;;  %1985 = vmatpush.msra.mxu3 %v3712_v62  ;;  %v3773_v35 = vand.u32 4294901760, %v1713_v19 }
 0x106   :  { %1738 = vmatpush.msra.mxu0 %v3712_v62  ;;  %v1835_v43 = vsub.f32 %v1833_v34, %v3745_v38 }
 0x107   :  { %v785_v7 = vpop.f32.mrf.mxu1  ;;  %1923 = vmatpush.msra.mxu2 %v1827_v4  ;;  %1987 = vmatpush.msra.mxu3 %v3725_v8  ;;  %v1857_v60 = vsub.f32 %v1713_v19, %v3773_v35 }
 0x108   :  { %v786_v61 = vadd.f32 %v785_v7, %v734_v9  ;;  %v3625_v11 = vpop.f32.mrf.mxu0  ;;  %v851_v29 = vpop.f32.mrf.mxu2  ;;  %v1823_v9 = vsub.f32 %v1821_v18, %v3722_v37  ;;  %v3737_v7 = vand.u32 4294901760, %v1716_v56  ;;  %1740 = vmatpush.msra.mxu0 %v3725_v8  ;;  %v1836_v2 = vand.u32 4294901760, %v1835_v43  ;;  %v1712_v18 = vld [vmem:[%s4047_s2 + $0x18] sm:$0xff] }
 0x109   :  { %1926 = vmatpush.msra.mxu2 %v1833_v34  ;;  %v3795_v34 = vand.u32 4294901760, %v1857_v60 }
 0x10a   :  { %v852_v5 = vadd.f32 %v851_v29, %v786_v61  ;;  %v1818_v61 = vand.u32 4294901760, %v1817_v30  ;;  %v1715_v29 = vld [vmem:[%s4047_s2 + $0x30] sm:$0xff]  ;;  %v1839_v57 = vsub.f32 %v1716_v56, %v3737_v7  ;;  %1989 = vmatpush.msra.mxu3 %v3737_v7  ;;  %1742 = vmatpush.msra.mxu0 %v3737_v7  ;;  %v3790_v56 = vand.u32 4294901760, %v1851_v21 }
 0x10b   :  { %v895_v13 = vpop.f32.mrf.mxu3  ;;  %v3751_v10 = vand.u32 4294901760, %v1715_v29  ;;  %v1859_v43 = vsub.f32 %v1857_v60, %v3795_v34 }
 0x10c   :  { %v3627_v15 = vadd.f32 %v895_v13, %v852_v5  ;;  %v1824_v5 = vand.u32 4294901760, %v1823_v9  ;;  %v1829_v13 = vsub.f32 %v1827_v4, %v3734_v48  ;;  %1819 = vmatpush.msra.mxu1 %v1818_v61  ;;  %v3759_v42 = vand.u32 4294901760, %v1839_v57  ;;  %1929 = vmatpush.msra.mxu2 %v1839_v57  ;;  %v1711_v9 = vld [vmem:[%s4047_s2 + $0x10] sm:$0xff] }
 0x10d   :  { %v1845_v3 = vsub.f32 %v1715_v29, %v3751_v10  ;;  %1991 = vmatpush.msra.mxu3 %v3751_v10  ;;  %1744 = vmatpush.msra.mxu0 %v3751_v10  ;;  %v3786_v4 = vand.u32 4294901760, %v1712_v18  ;;  %v3799_v29 = vand.u32 4294901760, %v1711_v9 }
 0x10e   :  { %4205 = vst [vmem:[#allocation4_spill] sm:$0xff] %v3627_v15  ;;  %v1830_v58 = vand.u32 4294901760, %v1829_v13  ;;  %1825 = vmatpush.msra.mxu1 %v1824_v5  ;;  %v1841_v59 = vsub.f32 %v1839_v57, %v3759_v42  ;;  %v1853_v57 = vsub.f32 %v1851_v21, %v3790_v56 }
 0x10f   :  { %v3778_v23 = vand.u32 4294901760, %v1845_v3  ;;  %1932 = vmatpush.msra.mxu2 %v1845_v3  ;;  %1993 = vmatpush.msra.mxu3 %v3766_v28  ;;  %v1863_v61 = vsub.f32 %v1712_v18, %v3786_v4  ;;  %v1869_v19 = vsub.f32 %v1711_v9, %v3799_v29  ;;  %v1709_v18 = vld [vmem:[%s4047_s2] sm:$0xff] }
 0x110   :  { %1831 = vmatpush.msra.mxu1 %v1830_v58  ;;  %v1842_v33 = vand.u32 4294901760, %v1841_v59  ;;  %1746 = vmatpush.msra.mxu0 %v3766_v28  ;;  %v1854_v59 = vand.u32 4294901760, %v1853_v57  ;;  %v3831_v57 = vand.u32 4294901760, %v1709_v18 }
 0x111   :  { %v3629_v20 = vpop.f32.mrf.mxu0  ;;  %v1847_v30 = vsub.f32 %v1845_v3, %v3778_v23  ;;  %1935 = vmatpush.msra.mxu2 %v1851_v21  ;;  %1995 = vmatpush.msra.mxu3 %v3773_v35  ;;  %v3811_v3 = vand.u32 4294901760, %v1863_v61  ;;  %v3818_v21 = vand.u32 4294901760, %v1710_v39 }
 0x112   :  { %v3631_v24 = vpop.f32.mrf.mxu1  ;;  %1837 = vmatpush.msra.mxu1 %v1836_v2  ;;  %1748 = vmatpush.msra.mxu0 %v3773_v35 }
 0x113   :  { %v3633_v12 = vpop.f32.mrf.mxu2  ;;  %v1848_v13 = vand.u32 4294901760, %v1847_v30  ;;  %1938 = vmatpush.msra.mxu2 %v1857_v60  ;;  %1997 = vmatpush.msra.mxu3 %v3786_v4  ;;  %v1865_v60 = vsub.f32 %v1863_v61, %v3811_v3  ;;  %v3824_v30 = vand.u32 4294901760, %v1869_v19 }
 0x114   :  { %1843 = vmatpush.msra.mxu1 %v1842_v33  ;;  %1750 = vmatpush.msra.mxu0 %v3786_v4  ;;  %v1860_v33 = vand.u32 4294901760, %v1859_v43  ;;  %v1881_v43 = vsub.f32 %v1709_v18, %v3831_v57 }
 0x115   :  { %v3635_v50 = vpop.f32.mrf.mxu3  ;;  %1941 = vmatpush.msra.mxu2 %v1863_v61  ;;  %1999 = vmatpush.msra.mxu3 %v3799_v29  ;;  %v1866_v15 = vand.u32 4294901760, %v1865_v60  ;;  %v1871_v45 = vsub.f32 %v1869_v19, %v3824_v30 }
 0x116   :  { %1849 = vmatpush.msra.mxu1 %v1848_v13  ;;  %1752 = vmatpush.msra.mxu0 %v3799_v29  ;;  %v1875_v13 = vsub.f32 %v1710_v39, %v3818_v21 }
 0x117   :  { %1944 = vmatpush.msra.mxu2 %v1869_v19  ;;  %2001 = vmatpush.msra.mxu3 %v3818_v21  ;;  %v1872_v17 = vand.u32 4294901760, %v1871_v45 }
 0x118   :  { %1855 = vmatpush.msra.mxu1 %v1854_v59  ;;  %1754 = vmatpush.msra.mxu0 %v3818_v21  ;;  %v3836_v61 = vand.u32 4294901760, %v1875_v13  ;;  %v3844_v59 = vand.u32 4294901760, %v1881_v43 }
 0x119   :  { %1947 = vmatpush.msra.mxu2 %v1875_v13  ;;  %2003 = vmatpush.msra.mxu3 %v3831_v57 }
 0x11a   :  { %v3645_v40 = vpop.f32.mrf.mxu0  ;;  %v3647_v46 = vpop.f32.mrf.mxu1  ;;  %1861 = vmatpush.msra.mxu1 %v1860_v33  ;;  %1756 = vmatpush.msra.mxu0 %v3831_v57  ;;  %v1877_v19 = vsub.f32 %v1875_v13, %v3836_v61  ;;  %v1062_v33 = vadd.f32 %v3631_v24, %v3625_v11 }
 0x11b   :  { %v3654_v52 = vpop.f32.mrf.mxu2  ;;  %1950 = vmatpush.msra.mxu2 %v1881_v43  ;;  %2327 = vmatpush.msrb.mxu3 %v3640_v0 }
 0x11c   :  { %1867 = vmatpush.msra.mxu1 %v1866_v15  ;;  %v1878_v18 = vand.u32 4294901760, %v1877_v19  ;;  %v1883_v15 = vsub.f32 %v1881_v43, %v3844_v59  ;;  %2032 = vmatpush.msrb.mxu0 %v3659_v41  ;;  %v1128_v24 = vadd.f32 %v3633_v12, %v1062_v33  ;;  %v1066_v12 = vadd.f32 %v3647_v46, %v3629_v20  ;;  %v4206_v33 = vld [vmem:[#allocation2_spill] sm:$0xff] }
 0x11d   :  { %2311 = vmatpush.msrb.mxu2 %v3659_v41  ;;  %2328 = vmatpush.msrb.mxu3 %v3650_v44 }
 0x11e   :  { %v3669_v36 = vpop.f32.mrf.mxu3  ;;  %1873 = vmatpush.msra.mxu1 %v1872_v17  ;;  %v1884_v11 = vand.u32 4294901760, %v1883_v15  ;;  %2036 = vmatpush.msrb.mxu0 %v3672_v54  ;;  %v1182_v41 = vadd.f32 %v3635_v50, %v1128_v24  ;;  %v1133_v20 = vadd.f32 %v3654_v52, %v1066_v12 }
 0x11f   :  { %2312 = vmatpush.msrb.mxu2 %v3672_v54  ;;  %2329 = vmatpush.msrb.mxu3 %v3662_v16 }
 0x120   :  { %1879 = vmatpush.msra.mxu1 %v1878_v18  ;;  %2040 = vmatpush.msrb.mxu0 %v3683_v49  ;;  %v1188_v52 = vadd.f32 %v3669_v36, %v1133_v20  ;;  %v4207_v20 = vld [vmem:[#allocation3_spill] sm:$0xff] }
 0x121   :  { %2313 = vmatpush.msrb.mxu2 %v3683_v49  ;;  %2330 = vmatpush.msrb.mxu3 %v3675_v14 }
 0x122   :  { %v3693_v25 = vpop.f32.mrf.mxu1  ;;  %1885 = vmatpush.msra.mxu1 %v1884_v11  ;;  %2044 = vmatpush.msrb.mxu0 %v3696_v51 }
 0x123   :  { %v3700_v1 = vpop.f32.mrf.mxu0  ;;  %2314 = vmatpush.msrb.mxu2 %v3696_v51  ;;  %2331 = vmatpush.msrb.mxu3 %v3687_v63 }
 0x124   :  { %v3708_v55 = vpop.f32.mrf.mxu2  ;;  %2111 = vmatpush.msrb.mxu1 %v3640_v0  ;;  %2048 = vmatpush.msrb.mxu0 %v3714_v31 }
 0x125   :  { %2315 = vmatpush.msrb.mxu2 %v3714_v31  ;;  %2332 = vmatpush.msrb.mxu3 %v3698_v32 }
 0x126   :  { %v3720_v47 = vpop.f32.mrf.mxu3  ;;  %2113 = vmatpush.msrb.mxu1 %v3650_v44  ;;  %2052 = vmatpush.msrb.mxu0 %v3722_v37 }
 0x127   :  { %2316 = vmatpush.msrb.mxu2 %v3722_v37  ;;  %2333 = vmatpush.msrb.mxu3 %v3712_v62 }
 0x128   :  { %2115 = vmatpush.msrb.mxu1 %v3662_v16  ;;  %2056 = vmatpush.msrb.mxu0 %v3734_v48  ;;  %v1070_v16 = vadd.f32 %v3693_v25, %v3645_v40 }
 0x129   :  { %2317 = vmatpush.msrb.mxu2 %v3734_v48  ;;  %2334 = vmatpush.msrb.mxu3 %v3725_v8 }
 0x12a   :  { %2117 = vmatpush.msrb.mxu1 %v3675_v14  ;;  %2060 = vmatpush.msrb.mxu0 %v3745_v38  ;;  %v1138_v36 = vadd.f32 %v3708_v55, %v1070_v16 }
 0x12b   :  { %v3749_v22 = vpop.f32.mrf.mxu1  ;;  %2318 = vmatpush.msrb.mxu2 %v3745_v38  ;;  %2335 = vmatpush.msrb.mxu3 %v3737_v7 }
 0x12c   :  { %v3756_v26 = vpop.f32.mrf.mxu0  ;;  %2119 = vmatpush.msrb.mxu1 %v3687_v63  ;;  %2064 = vmatpush.msrb.mxu0 %v3759_v42  ;;  %v1074_v55 = vadd.f32 %v3749_v22, %v3700_v1 }
 0x12d   :  { %v3763_v6 = vpop.f32.mrf.mxu2  ;;  %v1269_v49 = vadd.f32 %v3756_v26, %v1182_v41  ;;  %2319 = vmatpush.msrb.mxu2 %v3759_v42  ;;  %2336 = vmatpush.msrb.mxu3 %v3751_v10 }
 0x12e   :  { %2121 = vmatpush.msrb.mxu1 %v3698_v32  ;;  %2068 = vmatpush.msrb.mxu0 %v3778_v23 }
 0x12f   :  { %v3776_v27 = vpop.f32.mrf.mxu3  ;;  %2320 = vmatpush.msrb.mxu2 %v3778_v23  ;;  %2337 = vmatpush.msrb.mxu3 %v3766_v28 }
 0x130   :  { %2123 = vmatpush.msrb.mxu1 %v3712_v62  ;;  %2072 = vmatpush.msrb.mxu0 %v3790_v56 }
 0x131   :  { %2321 = vmatpush.msrb.mxu2 %v3790_v56  ;;  %2338 = vmatpush.msrb.mxu3 %v3773_v35 }
 0x132   :  { %2125 = vmatpush.msrb.mxu1 %v3725_v8  ;;  %2076 = vmatpush.msrb.mxu0 %v3795_v34  ;;  %v1194_v8 = vadd.f32 %v3720_v47, %v1138_v36  ;;  %v1143_v47 = vadd.f32 %v3763_v6, %v1074_v55  ;;  %v4208_v55 = vld [vmem:[#allocation4_spill] sm:$0xff] }
 0x133   :  { %v3802_v5 = vpop.f32.mrf.mxu1  ;;  %2322 = vmatpush.msrb.mxu2 %v3795_v34  ;;  %2339 = vmatpush.msrb.mxu3 %v3786_v4 }
 0x134   :  { %v3808_v58 = vpop.f32.mrf.mxu0  ;;  %v1318_v46 = vadd.f32 %v3802_v5, %v1269_v49  ;;  %2127 = vmatpush.msrb.mxu1 %v3737_v7  ;;  %2080 = vmatpush.msrb.mxu0 %v3811_v3 }
 0x135   :  { %v1273_v31 = vadd.f32 %v3808_v58, %v1188_v52  ;;  %2323 = vmatpush.msrb.mxu2 %v3811_v3  ;;  %2340 = vmatpush.msrb.mxu3 %v3799_v29 }
 0x136   :  { %v3816_v2 = vpop.f32.mrf.mxu2  ;;  %2129 = vmatpush.msrb.mxu1 %v3751_v10  ;;  %2084 = vmatpush.msrb.mxu0 %v3824_v30 }
 0x137   :  { %v3828_v9 = vpop.f32.mrf.mxu3  ;;  %v1366_v14 = vadd.f32 %v3816_v2, %v1318_v46  ;;  %2324 = vmatpush.msrb.mxu2 %v3824_v30  ;;  %2341 = vmatpush.msrb.mxu3 %v3818_v21 }
 0x138   :  { %2131 = vmatpush.msrb.mxu1 %v3766_v28  ;;  %2088 = vmatpush.msrb.mxu0 %v3836_v61 }
 0x139   :  { %v1466_v25 = vadd.f32 %v3828_v9, %v1366_v14  ;;  %2325 = vmatpush.msrb.mxu2 %v3836_v61  ;;  %2342 = vmatpush.msrb.mxu3 %v3831_v57 }
 0x13a   :  { %2133 = vmatpush.msrb.mxu1 %v3773_v35  ;;  %2092 = vmatpush.msrb.mxu0 %v3844_v59  ;;  %v1200_v35 = vadd.f32 %v3776_v27, %v1143_v47 }
 0x13b   :  { %v3841_v39 = vpop.f32.mrf.mxu1  ;;  %2326 = vmatpush.msrb.mxu2 %v3844_v59 }
 0x13c   :  { %v3848_v60 = vpop.f32.mrf.mxu0  ;;  %v1322_v32 = vadd.f32 %v3841_v39, %v1273_v31  ;;  %2135 = vmatpush.msrb.mxu1 %v3786_v4 }
 0x13d   :  { %v1277_v1 = vadd.f32 %v3848_v60, %v1194_v8 }
 0x13e   :  { %v3852_v45 = vpop.f32.mrf.mxu2  ;;  %2137 = vmatpush.msrb.mxu1 %v3799_v29 }
 0x13f   :  { %v3858_v13 = vpop.f32.mrf.mxu3  ;;  %v1374_v48 = vadd.f32 %v3852_v45, %v1322_v32 }
 0x140   :  { %2139 = vmatpush.msrb.mxu1 %v3818_v21 }
 0x141   :  { %v1470_v10 = vadd.f32 %v3858_v13, %v1374_v48 }
 0x142   :  { %2141 = vmatpush.msrb.mxu1 %v3831_v57 }
 0x143   :  { %v3867_v17 = vpop.f32.mrf.mxu1 }
 0x144   :  { %v3874_v54 = vpop.f32.mrf.mxu0  ;;  %v1326_v23 = vadd.f32 %v3867_v17, %v1277_v1 }
 0x145   :  { %v1281_v4 = vadd.f32 %v3874_v54, %v1200_v35 }
 0x146   :  { %v3878_v0 = vpop.f32.mrf.mxu2 }
 0x147   :  { %v3885_v50 = vpop.f32.mrf.mxu3  ;;  %v1382_v5 = vadd.f32 %v3878_v0, %v1326_v23 }
 0x149   :  { %v1474_v27 = vadd.f32 %v3885_v50, %v1382_v5 }
 0x14b   :  { %v3897_v44 = vpop.f32.mrf.mxu1 }
 0x14c   :  { %v1521_v51 = vpop.f32.mrf.mxu0  ;;  %v1330_v43 = vadd.f32 %v3897_v44, %v1281_v4 }
 0x14d   :  { %v1522_v62 = vadd.f32 %v1521_v51, %v1466_v25 }
 0x14e   :  { %v3907_v63 = vpop.f32.mrf.mxu2 }
 0x14f   :  { %v3914_v40 = vpop.f32.mrf.mxu3  ;;  %v1390_v21 = vadd.f32 %v3907_v63, %v1330_v43 }
 0x151   :  { %v1478_v54 = vadd.f32 %v3914_v40, %v1390_v21 }
 0x153   :  { %v1570_v37 = vpop.f32.mrf.mxu1 }
 0x154   :  { %v1526_v38 = vpop.f32.mrf.mxu0  ;;  %v1571_v26 = vadd.f32 %v1570_v37, %v1522_v62 }
 0x155   :  { %v1527_v28 = vadd.f32 %v1526_v38, %v1470_v10 }
 0x156   :  { %v1642_v7 = vpop.f32.mrf.mxu2 }
 0x157   :  { %v1643_v22 = vadd.f32 %v1642_v7, %v1571_v26  ;;  %v1686_v42 = vpop.f32.mrf.mxu3 }
 0x159   :  { %v1687_v56 = vadd.f32 %v1686_v42, %v1643_v22 }
 0x15b   :  { %v3950_v6 = vsub.f32 %v3619_v53, %v1687_v56  ;;  %v1576_v34 = vpop.f32.mrf.mxu1 }
 0x15c   :  { %v1577_v3 = vadd.f32 %v1576_v34, %v1527_v28  ;;  %v1531_v53 = vpop.f32.mrf.mxu0 }
 0x15d   :  { %v1705_v58 = vmul.f32 %v3950_v6, %v3950_v6  ;;  %v1532_v59 = vadd.f32 %v1531_v53, %v1474_v27 }
 0x15e   :  { %v1646_v2 = vpop.f32.mrf.mxu2 }
 0x15f   :  { %v3962_v30 = vand.u32 4294901760, %v1705_v58  ;;  %v1647_v9 = vadd.f32 %v1646_v2, %v1577_v3  ;;  %v1690_v61 = vpop.f32.mrf.mxu3 }
 0x161   :  { %v1758_v39 = vsub.f32 %v1705_v58, %v3962_v30  ;;  %v1691_v19 = vadd.f32 %v1690_v61, %v1647_v9  ;;  %1887 = vmatmul.f32.vlgmr.msra.gmra.mxu1 %v3962_v30 }
 0x163   :  { %v1759_v29 = vand.u32 4294901760, %v1758_v39  ;;  %v3971_v60 = vsub.f32 %v4206_v33, %v1691_v19  ;;  %1953 = vmatmul.f32.vlgmr.msra.gmra.mxu2 %v1758_v39  ;;  %v1582_v45 = vpop.f32.mrf.mxu1 }
 0x164   :  { %v1583_v13 = vadd.f32 %v1582_v45, %v1532_v59  ;;  %v1536_v57 = vpop.f32.mrf.mxu0 }
 0x165   :  { %v1760_v18 = vsub.f32 %v1758_v39, %v1759_v29  ;;  %v1706_v15 = vmul.f32 %v3971_v60, %v3971_v60  ;;  %2007 = vmatmul.f32.vlgmr.msra.gmra.mxu3 %v1759_v29  ;;  %v1537_v50 = vadd.f32 %v1536_v57, %v1478_v54 }
 0x166   :  { %v1650_v11 = vpop.f32.mrf.mxu2 }
 0x167   :  { %v1761_v24 = vand.u32 4294901760, %v1760_v18  ;;  %v1765_v17 = vand.u32 4294901760, %v1706_v15  ;;  %v1651_v41 = vadd.f32 %v1650_v11, %v1583_v13  ;;  %v1694_v12 = vpop.f32.mrf.mxu3 }
 0x169   :  { %v1695_v0 = vadd.f32 %v1694_v12, %v1651_v41  ;;  %1762 = vmatmul.f32.vlgmr.msra.gmra.mxu0 %v1761_v24  ;;  %1891 = vmatmul.f32.gmra.mxu1 %v1765_v17  ;;  %v1766_v49 = vsub.f32 %v1706_v15, %v1765_v17 }
 0x16b   :  { %v3978_v46 = vsub.f32 %v4207_v20, %v1695_v0  ;;  %1958 = vmatmul.f32.gmra.mxu2 %v1766_v49  ;;  %v1767_v44 = vand.u32 4294901760, %v1766_v49  ;;  %v1588_v52 = vpop.f32.mrf.mxu1 }
 0x16c   :  { %v1589_v14 = vadd.f32 %v1588_v52, %v1537_v50 }
 0x16d   :  { %v1707_v16 = vmul.f32 %v3978_v46, %v3978_v46  ;;  %2013 = vmatmul.f32.gmra.mxu3 %v1767_v44  ;;  %v1768_v51 = vsub.f32 %v1766_v49, %v1767_v44 }
 0x16e   :  { %v1654_v63 = vpop.f32.mrf.mxu2 }
 0x16f   :  { %v1773_v31 = vand.u32 4294901760, %v1707_v16  ;;  %v1655_v40 = vadd.f32 %v1654_v63, %v1589_v14  ;;  %v1769_v36 = vand.u32 4294901760, %v1768_v51  ;;  %v1698_v25 = vpop.f32.mrf.mxu3 }
 0x171   :  { %v1699_v32 = vadd.f32 %v1698_v25, %v1655_v40  ;;  %1770 = vmatmul.f32.gmra.mxu0 %v1769_v36  ;;  %1895 = vmatmul.f32.gmra.mxu1 %v1773_v31  ;;  %v1774_v62 = vsub.f32 %v1707_v16, %v1773_v31 }
 0x173   :  { %v3983_v37 = vsub.f32 %v4208_v55, %v1699_v32  ;;  %1963 = vmatmul.f32.gmra.mxu2 %v1774_v62  ;;  %v1775_v8 = vand.u32 4294901760, %v1774_v62 }
 0x175   :  { %v1708_v48 = vmul.f32 %v3983_v37, %v3983_v37  ;;  %2019 = vmatmul.f32.gmra.mxu3 %v1775_v8  ;;  %v1776_v38 = vsub.f32 %v1774_v62, %v1775_v8 }
 0x177   :  { %v1781_v26 = vand.u32 4294901760, %v1708_v48  ;;  %v1777_v7 = vand.u32 4294901760, %v1776_v38 }
 0x179   :  { %1778 = vmatmul.f32.gmra.mxu0 %v1777_v7  ;;  %1899 = vmatmul.f32.gmra.mxu1 %v1781_v26  ;;  %v1782_v1 = vsub.f32 %v1708_v48, %v1781_v26 }
 0x17b   :  { %1968 = vmatmul.f32.gmra.mxu2 %v1782_v1  ;;  %v1783_v22 = vand.u32 4294901760, %v1782_v1 }
 0x17d   :  { %2025 = vmatmul.f32.gmra.mxu3 %v1783_v22  ;;  %v1784_v47 = vsub.f32 %v1782_v1, %v1783_v22 }
 0x17f   :  { %v1785_v42 = vand.u32 4294901760, %v1784_v47 }
 0x181   :  { %1786 = vmatmul.f32.gmra.mxu0 %v1785_v42  ;;  %2143 = vmatmul.f32.vlgmr.msrb.gmra.mxu1 %v3962_v30 }
 0x183   :  { %2102 = vmatmul.f32.vlgmr.msrb.gmra.mxu2 %v1773_v31 }
 0x185   :  { %2151 = vmatmul.f32.vlgmr.msrb.gmra.mxu3 %v1773_v31 }
 0x189   :  { %2094 = vmatmul.f32.vlgmr.msrb.gmra.mxu0 %v3962_v30  ;;  %2147 = vmatmul.f32.gmra.mxu1 %v1765_v17 }
 0x18b   :  { %2106 = vmatmul.f32.gmra.mxu2 %v1781_v26 }
 0x18d   :  { %2155 = vmatmul.f32.gmra.mxu3 %v1781_v26 }
 0x191   :  { %2098 = vmatmul.f32.gmra.mxu0 %v1765_v17 }
 0x1de   :  { %v1888_v10 = vpop.f32.mrf.mxu1 }
 0x1e6   :  { %v1763_v23 = vpop.f32.mrf.mxu0  ;;  %v1954_v56 = vpop.f32.mrf.mxu2 }
 0x1e7   :  { %v1892_v28 = vpop.f32.mrf.mxu1  ;;  %v1764_v9 = vadd.f32 1e-05, %v1763_v23 }
 0x1e8   :  { %v2008_v34 = vpop.f32.mrf.mxu3 }
 0x1e9   :  { %v1889_v30 = vadd.f32 %v1888_v10, %v1764_v9 }
 0x1eb   :  { %v1955_v59 = vadd.f32 %v1954_v56, %v1889_v30  ;;  %v2213_v30 = vld [vmem:[%s4049_s4 + $0x10] sm:$0xff] }
 0x1ed   :  { %v2009_v18 = vadd.f32 %v2008_v34, %v1955_v59 }
 0x1ee   :  { %v1771_v35 = vpop.f32.mrf.mxu0  ;;  %v1959_v5 = vpop.f32.mrf.mxu2 }
 0x1ef   :  { %v1896_v3 = vpop.f32.mrf.mxu1  ;;  %v1772_v33 = vadd.f32 1e-05, %v1771_v35  ;;  %v2203_v35 = vld [vmem:[%s4048_s3] sm:$0xff] }
 0x1f0   :  { %v2014_v58 = vpop.f32.mrf.mxu3 }
 0x1f1   :  { %v1893_v15 = vadd.f32 %v1892_v28, %v1772_v33 }
 0x1f3   :  { %v1960_v0 = vadd.f32 %v1959_v5, %v1893_v15  ;;  %v2204_v15 = vld [vmem:[%s4048_s3 + $0x8] sm:$0xff] }
 0x1f5   :  { %v2015_v44 = vadd.f32 %v2014_v58, %v1960_v0 }
 0x1f6   :  { %v1779_v53 = vpop.f32.mrf.mxu0  ;;  %v1964_v2 = vpop.f32.mrf.mxu2 }
 0x1f7   :  { %v1780_v61 = vadd.f32 1e-05, %v1779_v53  ;;  %v1900_v27 = vpop.f32.mrf.mxu1  ;;  %v2205_v53 = vld [vmem:[%s4048_s3 + $0x10] sm:$0xff] }
 0x1f8   :  { %v2020_v4 = vpop.f32.mrf.mxu3 }
 0x1f9   :  { %v1897_v43 = vadd.f32 %v1896_v3, %v1780_v61 }
 0x1fb   :  { %v1965_v45 = vadd.f32 %v1964_v2, %v1897_v43 }
 0x1fd   :  { %v2021_v13 = vadd.f32 %v2020_v4, %v1965_v45  ;;  %v2211_v4 = vld [vmem:[%s4049_s4] sm:$0xff] }
 0x1fe   :  { %v1787_v39 = vpop.f32.mrf.mxu0  ;;  %v1969_v19 = vpop.f32.mrf.mxu2 }
 0x1ff   :  { %v1788_v21 = vadd.f32 1e-05, %v1787_v39  ;;  %v2144_v24 = vpop.f32.mrf.mxu1 }
 0x200   :  { %v2026_v29 = vpop.f32.mrf.mxu3 }
 0x201   :  { %v1901_v11 = vadd.f32 %v1900_v27, %v1788_v21 }
 0x203   :  { %v1970_v50 = vadd.f32 %v1969_v19, %v1901_v11 }
 0x205   :  { %v2027_v52 = vadd.f32 %v2026_v29, %v1970_v50 }
 0x206   :  { %v2095_v17 = vpop.f32.mrf.mxu0  ;;  %v2103_v57 = vpop.f32.mrf.mxu2 }
 0x207   :  { %v2096_v41 = vadd.f32 %v2095_v17, %v2009_v18  ;;  %v2104_v12 = vadd.f32 %v2103_v57, %v2021_v13  ;;  %v2148_v63 = vpop.f32.mrf.mxu1  ;;  %v2212_v17 = vld [vmem:[%s4049_s4 + $0x8] sm:$0xff] }
 0x208   :  { %v2152_v54 = vpop.f32.mrf.mxu3 }
 0x209   :  { %v2145_v49 = vadd.f32 %v2144_v24, %v2096_v41  ;;  %v2153_v20 = vadd.f32 %v2152_v54, %v2104_v12  ;;  %v2206_v24 = vld [vmem:[%s4048_s3 + $0x18] sm:$0xff] }
 0x20a   :  { %v2214_v12 = vld [vmem:[%s4049_s4 + $0x18] sm:$0xff] }
 0x20b   :  { %2343 = vrsqrt.f32 %v2145_v49  ;;  %vm2165_vm3 = vweird.f32 %v2145_v49  ;;  %vm2185_vm5 = vweird.f32 %v2153_v20 }
 0x20c   :  { %2345 = vrsqrt.f32 %v2153_v20 }
 0x20e   :  { %v2099_v16 = vpop.f32.mrf.mxu0  ;;  %v2107_v51 = vpop.f32.mrf.mxu2 }
 0x20f   :  { %v2100_v14 = vadd.f32 %v2099_v16, %v2015_v44  ;;  %v2108_v31 = vadd.f32 %v2107_v51, %v2027_v52 }
 0x210   :  { %v2156_v40 = vpop.f32.mrf.mxu3 }
 0x211   :  { %v2344_v36 = vpop.eup %2343  ;;  %v2149_v25 = vadd.f32 %v2148_v63, %v2100_v14  ;;  %v2157_v55 = vadd.f32 %v2156_v40, %v2108_v31 }
 0x212   :  { %v2346_v32 = vpop.eup %2345  ;;  %v2160_v62 = vmul.f32 %v2344_v36, %v2145_v49  ;;  %vm2166_vm1 = vweird.f32 %v2344_v36 }
 0x213   :  { %v2180_v8 = vmul.f32 %v2346_v32, %v2153_v20  ;;  %2347 = vrsqrt.f32 %v2149_v25  ;;  %vm2186_vm2 = vweird.f32 %v2346_v32  ;;  %vm2167_vm4 = vmor %vm2165_vm3, %vm2166_vm1  ;;  %vm2175_vm9 = vweird.f32 %v2149_v25 }
 0x214   :  { %v2161_v48 = vmul.f32 %v2344_v36, %v2160_v62  ;;  %2349 = vrsqrt.f32 %v2157_v55  ;;  %vm2187_vm6 = vmor %vm2185_vm5, %vm2186_vm2  ;;  %vm2195_vm11 = vweird.f32 %v2157_v55 }
 0x215   :  { %v2181_v38 = vmul.f32 %v2346_v32, %v2180_v8 }
 0x216   :  { %v2162_v26 = vmul.f32 0.5, %v2161_v48 }
 0x217   :  { %v2182_v7 = vmul.f32 0.5, %v2181_v38 }
 0x218   :  { %v2163_v1 = vsub.f32 1.5, %v2162_v26 }
 0x219   :  { %v2348_v22 = vpop.eup %2347  ;;  %v2183_v47 = vsub.f32 1.5, %v2182_v7 }
 0x21a   :  { %v2350_v42 = vpop.eup %2349  ;;  %v2164_v10 = vmul.f32 %v2344_v36, %v2163_v1  ;;  %v2170_v23 = vmul.f32 %v2348_v22, %v2149_v25  ;;  %vm2176_vm7 = vweird.f32 %v2348_v22 }
 0x21b   :  { %v2184_v56 = vmul.f32 %v2346_v32, %v2183_v47  ;;  %v2190_v28 = vmul.f32 %v2350_v42, %v2157_v55  ;;  %vm2196_vm8 = vweird.f32 %v2350_v42  ;;  %vm2177_vm10 = vmor %vm2175_vm9, %vm2176_vm7 }
 0x21c   :  { %v2168_v34 = vsel %vm2167_vm4, %v2344_v36, %v2164_v10  ;;  %v2171_v5 = vmul.f32 %v2348_v22, %v2170_v23  ;;  %vm2197_vm12 = vmor %vm2195_vm11, %vm2196_vm8 }
 0x21d   :  { %v2199_v58 = vmul.f32 %v2168_v34, %v3950_v6  ;;  %v2188_v3 = vsel %vm2187_vm6, %v2346_v32, %v2184_v56  ;;  %v2191_v2 = vmul.f32 %v2350_v42, %v2190_v28 }
 0x21e   :  { %v2201_v9 = vmul.f32 %v2188_v3, %v3978_v46  ;;  %v2172_v61 = vmul.f32 0.5, %v2171_v5 }
 0x21f   :  { %v2207_v27 = vmul.f32 %v2203_v35, %v2199_v58  ;;  %v2192_v43 = vmul.f32 0.5, %v2191_v2 }
 0x220   :  { %v2209_v6 = vmul.f32 %v2205_v53, %v2201_v9  ;;  %v2173_v39 = vsub.f32 1.5, %v2172_v61 }
 0x221   :  { %v4003_v19 = vadd.f32 %v2211_v4, %v2207_v27  ;;  %v2193_v29 = vsub.f32 1.5, %v2192_v43 }
 0x222   :  { %v4005_v59 = vadd.f32 %v2213_v30, %v2209_v6  ;;  %v2174_v33 = vmul.f32 %v2348_v22, %v2173_v39 }
 0x223   :  { %v2307_v46 = vmul.f32 -1.442695, %v4003_v19  ;;  %v2194_v45 = vmul.f32 %v2350_v42, %v2193_v29 }
 0x224   :  { %v2309_v21 = vmul.f32 -1.442695, %v4005_v59  ;;  %v2178_v18 = vsel %vm2177_vm10, %v2348_v22, %v2174_v33 }
 0x225   :  { %2351 = vpow2.f32 %v2307_v46  ;;  %v2200_v13 = vmul.f32 %v2178_v18, %v3971_v60  ;;  %v2198_v11 = vsel %vm2197_vm12, %v2350_v42, %v2194_v45 }
 0x226   :  { %2353 = vpow2.f32 %v2309_v21  ;;  %v2202_v41 = vmul.f32 %v2198_v11, %v3983_v37 }
 0x227   :  { %v2208_v57 = vmul.f32 %v2204_v15, %v2200_v13 }
 0x228   :  { %v2210_v54 = vmul.f32 %v2206_v24, %v2202_v41 }
 0x229   :  { %v4023_v0 = vadd.f32 %v2212_v17, %v2208_v57 }
 0x22a   :  { %v4025_v60 = vadd.f32 %v2214_v12, %v2210_v54 }
 0x22b   :  { %v2352_v49 = vpop.eup %2351  ;;  %v2308_v50 = vmul.f32 -1.442695, %v4023_v0 }
 0x22c   :  { %v2354_v20 = vpop.eup %2353  ;;  %v2231_v44 = vadd.f32 1.0, %v2352_v49  ;;  %v2310_v52 = vmul.f32 -1.442695, %v4025_v60 }
 0x22d   :  { %v2233_v16 = vadd.f32 1.0, %v2354_v20  ;;  %2355 = vpow2.f32 %v2308_v50 }
 0x22e   :  { %2357 = vrcp.f32 %v2231_v44  ;;  %v2244_v62 = vand.u32 2147483647, %v2231_v44  ;;  %v2246_v55 = vand.u32 2147483648, %v2231_v44  ;;  %vm2240_vm15 = vweird.f32 %v2231_v44 }
 0x22f   :  { %2359 = vrcp.f32 %v2233_v16  ;;  %v2276_v38 = vand.u32 2147483648, %v2233_v16  ;;  %v2274_v7 = vand.u32 2147483647, %v2233_v16  ;;  %vm2270_vm1 = vweird.f32 %v2233_v16 }
 0x230   :  { %2361 = vpow2.f32 %v2310_v52  ;;  %v2247_v47 = vor.u32 1.1754944e-38, %v2246_v55  ;;  %vm2245_vm2 = vcmp.eq.f32.partialorder %v2244_v62, 8.507059e+37 }
 0x231   :  { %v2277_v23 = vor.u32 1.1754944e-38, %v2276_v38  ;;  %vm2275_vm4 = vcmp.eq.f32.partialorder %v2274_v7, 8.507059e+37 }
 0x233   :  { %v2356_v37 = vpop.eup %2355 }
 0x234   :  { %v2358_v14 = vpop.eup %2357  ;;  %v2232_v51 = vadd.f32 1.0, %v2356_v37 }
 0x235   :  { %v2360_v63 = vpop.eup %2359  ;;  %v2236_v31 = vmul.f32 %v2358_v14, %v2231_v44  ;;  %vm2241_vm13 = vweird.f32 %v2358_v14 }
 0x236   :  { %v2362_v40 = vpop.eup %2361  ;;  %v2266_v36 = vmul.f32 %v2360_v63, %v2233_v16  ;;  %2363 = vrcp.f32 %v2232_v51  ;;  %vm2271_vm14 = vweird.f32 %v2360_v63  ;;  %vm2242_vm0 = vmor %vm2240_vm15, %vm2241_vm13  ;;  %v2261_v2 = vand.u32 2147483648, %v2232_v51 }
 0x237   :  { %v2237_v25 = vsub.f32 1.0, %v2236_v31  ;;  %v2234_v32 = vadd.f32 1.0, %v2362_v40  ;;  %vm2272_vm3 = vmor %vm2270_vm1, %vm2271_vm14  ;;  %v2259_v61 = vand.u32 2147483647, %v2232_v51  ;;  %vm2255_vm6 = vweird.f32 %v2232_v51 }
 0x238   :  { %v2267_v8 = vsub.f32 1.0, %v2266_v36  ;;  %v2262_v6 = vor.u32 1.1754944e-38, %v2261_v2 }
 0x239   :  { %v2238_v48 = vmul.f32 %v2358_v14, %v2237_v25  ;;  %2365 = vrcp.f32 %v2234_v32  ;;  %v2291_v43 = vand.u32 2147483648, %v2234_v32  ;;  %vm2260_vm9 = vcmp.eq.f32.partialorder %v2259_v61, 8.507059e+37 }
 0x23a   :  { %v2268_v26 = vmul.f32 %v2360_v63, %v2267_v8  ;;  %vm2285_vm10 = vweird.f32 %v2234_v32 }
 0x23b   :  { %v2239_v1 = vadd.f32 %v2358_v14, %v2238_v48  ;;  %v2292_v45 = vor.u32 1.1754944e-38, %v2291_v43 }
 0x23c   :  { %v2364_v22 = vpop.eup %2363  ;;  %v2269_v42 = vadd.f32 %v2360_v63, %v2268_v26 }
 0x23d   :  { %v2243_v10 = vsel %vm2242_vm0, %v2358_v14, %v2239_v1  ;;  %v2251_v56 = vmul.f32 %v2364_v22, %v2232_v51  ;;  %vm2256_vm5 = vweird.f32 %v2364_v22 }
 0x23e   :  { %v2248_v28 = vsel %vm2245_vm2, %v2247_v47, %v2243_v10  ;;  %v2273_v34 = vsel %vm2272_vm3, %v2360_v63, %v2269_v42  ;;  %vm2257_vm7 = vmor %vm2255_vm6, %vm2256_vm5 }
 0x23f   :  { %v2366_v35 = vpop.eup %2365  ;;  %v2295_v5 = vmul.f32 %v2248_v28, %v4003_v19  ;;  %v2278_v58 = vsel %vm2275_vm4, %v2277_v23, %v2273_v34  ;;  %v2252_v3 = vsub.f32 1.0, %v2251_v56  ;;  %v2289_v19 = vand.u32 2147483647, %v2234_v32 }
 0x240   :  { %v2297_v53 = vmul.f32 %v2278_v58, %v4005_v59  ;;  %v2281_v4 = vmul.f32 %v2366_v35, %v2234_v32  ;;  %vm2286_vm8 = vweird.f32 %v2366_v35 }
 0x241   :  { %2299 = vst [vmem:[%s4050_s5] sm:$0xff] %v2295_v5  ;;  %v2253_v9 = vmul.f32 %v2364_v22, %v2252_v3  ;;  %vm2287_vm11 = vmor %vm2285_vm10, %vm2286_vm8  ;;  %vm2290_vm12 = vcmp.eq.f32.partialorder %v2289_v19, 8.507059e+37 }
 0x242   :  { %2301 = vst [vmem:[%s4050_s5 + $0x10] sm:$0xff] %v2297_v53  ;;  %v2282_v27 = vsub.f32 1.0, %v2281_v4 }
 0x243   :  { %v2254_v30 = vadd.f32 %v2364_v22, %v2253_v9 }
 0x244   :  { %v2283_v39 = vmul.f32 %v2366_v35, %v2282_v27 }
 0x245   :  { %v2258_v29 = vsel %vm2257_vm7, %v2364_v22, %v2254_v30 }
 0x246   :  { %v2263_v59 = vsel %vm2260_vm9, %v2262_v6, %v2258_v29  ;;  %v2284_v33 = vadd.f32 %v2366_v35, %v2283_v39 }
 0x247   :  { %v2296_v46 = vmul.f32 %v2263_v59, %v4023_v0 }
 0x248   :  { %v2288_v21 = vsel %vm2287_vm11, %v2366_v35, %v2284_v33 }
 0x249   :  { %2300 = vst [vmem:[%s4050_s5 + $0x8] sm:$0xff] %v2296_v46  ;;  %v2293_v18 = vsel %vm2290_vm12, %v2292_v45, %v2288_v21 }
 0x24a   :  { %v2298_v15 = vmul.f32 %v2293_v18, %v4025_v60 }
 0x24c   :  { %2302 = vst [vmem:[%s4050_s5 + $0x18] sm:$0xff] %v2298_v15 }

</bundles_post_ra>
